<compile_context>
chip_gen: v6e
topology: v6e:2x2x1
jax: 0.10.0
libtpu: 0.0.40
codegen_flags: <defaults>
</compile_context>

<pallas_src>
import functools

import jax
import jax.numpy as jnp
from jax.experimental import pallas as pl
from jax.experimental.pallas import tpu as pltpu

EPS = 1e-12       # matches torch.nn.functional.normalize default eps
_ASUM_COLS = 8    # width of the ones matrix used to compute sum_p a[p,k] on MXU


def _netvlad_kernel(xc_ref, xh0_ref, xh1_ref, wconv_ref, bconv_ref,
                    wassign_ref, bassign_ref, cent_ref, out_ref,
                    s_acc, asum_acc, patch_ref,
                    *, bt, rt, w, c_in, nk, d):
    """Grid = (batch tiles ["parallel"], row tiles ["arbitrary", streamed]).

    xc_ref     : (bt, rt,  W+2, C_in) bf16  padded-image rows [t*rt, t*rt+rt)
    xh0_ref    : (bt, 1,   W+2, C_in) bf16  halo row t*rt+rt
    xh1_ref    : (bt, 1,   W+2, C_in) bf16  halo row t*rt+rt+1
    wconv_ref  : (9*C_in, D) bf16           conv weight in im2col layout
    bconv_ref  : (1, D) f32
    wassign_ref: (D, K) bf16                NetVLAD 1x1 assignment weight
    bassign_ref: (1, K) f32
    cent_ref   : (K, D) f32                 cluster centroids
    out_ref    : (bt, 1, K*D) f32           lane-dense flattened descriptor
    s_acc      : (bt, K, D) f32 scratch     running sum_p a[p,k] * xn[p,d]
    asum_acc   : (bt, K, 8) f32 scratch     running sum_p a[p,k] (8 equal cols)
    patch_ref  : (bt*rt*W, 9*C_in) bf16     im2col staging buffer
    """
    t = pl.program_id(1)

    @pl.when(t == 0)
    def _():
        s_acc[...] = jnp.zeros_like(s_acc)
        asum_acc[...] = jnp.zeros_like(asum_acc)

    pt = rt * w
    p_rows = bt * pt

    # Window assembly: rt center rows + the 2-row bottom halo (concat along an
    # untiled outer dim; no HBM duplication beyond re-reading 2 rows per tile).
    xwin = jnp.concatenate([xc_ref[...], xh0_ref[...], xh1_ref[...]], axis=1)

    # ---- encoder: 3x3 conv as ONE im2col matmul (contraction = 9*C_in).
    # Each dx column slice is read once and reused for the three dy taps.
    for dx in range(3):
        col = xwin[:, :, dx:dx + w, :]                       # (bt, rt+2, W, C)
        for dy in range(3):
            tap = dy * 3 + dx
            patch_ref[:, tap * c_in:(tap + 1) * c_in] = (
                col[:, dy:dy + rt].reshape(p_rows, c_in))

    feat = jnp.dot(patch_ref[...], wconv_ref[...],
                   preferred_element_type=jnp.float32)
    feat = jnp.maximum(feat + bconv_ref[...], 0.0)           # bias + ReLU (P,D)

    # ---- per-descriptor L2 norm; only the bf16 copy stays live downstream.
    inv = jax.lax.rsqrt(
        jnp.maximum(jnp.sum(feat * feat, axis=-1, keepdims=True), EPS * EPS))
    xn_bf = (feat * inv).astype(jnp.bfloat16)                # (P, D)

    # ---- soft assignment (1x1 conv) + exact softmax over clusters.
    logits = jnp.dot(xn_bf, wassign_ref[...],
                     preferred_element_type=jnp.float32) + bassign_ref[...]
    e = jnp.exp(logits - jnp.max(logits, axis=-1, keepdims=True))
    a_bf = (e / jnp.sum(e, axis=-1, keepdims=True)).astype(jnp.bfloat16)

    # ---- accumulate NetVLAD statistics across row tiles (both on the MXU).
    dn = (((1,), (1,)), ((0,), (0,)))                        # contract pt, batch bt
    a3 = a_bf.reshape(bt, pt, nk)
    xn3 = xn_bf.reshape(bt, pt, d)
    s_acc[...] += jax.lax.dot_general(a3, xn3, dn,
                                      preferred_element_type=jnp.float32)
    ones_cols = jnp.ones((bt, pt, _ASUM_COLS), jnp.bfloat16)
    asum_acc[...] += jax.lax.dot_general(a3, ones_cols, dn,
                                         preferred_element_type=jnp.float32)

    # ---- finalize: residuals, intra-norm, global norm, lane-dense store.
    @pl.when(t == pl.num_programs(1) - 1)
    def _():
        asum = asum_acc[...][:, :, 0:1]                      # (bt, K, 1)
        vlad = s_acc[...] - cent_ref[...][None, :, :] * asum
        vlad = vlad * jax.lax.rsqrt(
            jnp.maximum(jnp.sum(vlad * vlad, axis=-1, keepdims=True),
                        EPS * EPS))                          # intra-norm
        gsq = jnp.sum(vlad * vlad, axis=(-2, -1), keepdims=True)
        vlad = vlad * jax.lax.rsqrt(jnp.maximum(gsq, EPS * EPS))
        for k in range(nk):                                  # flatten K into lanes
            out_ref[:, :, k * d:(k + 1) * d] = vlad[:, k:k + 1, :]


# ----------------------------------------------------------------------------
# Tile selection (generation-aware via VMEM capacity) and wrapper.
# ----------------------------------------------------------------------------
def _round_up(x, m):
    return -(-x // m) * m


def _vmem_capacity_bytes():
    try:
        return int(pltpu.get_tpu_info().vmem_capacity_bytes)
    except Exception:
        return 64 * 1024 * 1024  # v7x-sized default is safe on every generation


def _pick_batch_tile(n):
    cap = min(8, max(1, n // 2))  # keep >= 2 steps on the parallel axis (megacore)
    for b in range(cap, 0, -1):
        if n % b == 0:
            return b
    return 1


def _vmem_bytes_estimate(bt, rt, W, C_in, D, K):
    """Conservative per-step live-VMEM estimate (includes 128-lane padding)."""
    lanes = lambda x: _round_up(max(x, 1), 128)
    rows = lambda x: _round_up(max(x, 1), 8)
    P = bt * rt * W
    window = 2 * 2 * bt * rows(rt + 2) * (W + 2) * lanes(C_in)   # bf16, 2 bufs
    patch = 2 * rows(P) * lanes(9 * C_in)                        # bf16 scratch
    feats = rows(P) * lanes(D) * (3 * 4 + 2)                     # f32 temps + bf16
    assign = rows(P) * lanes(K) * (2 * 4 + 2)
    accs = bt * K * (lanes(D) + lanes(_ASUM_COLS)) * 4
    outb = 2 * bt * lanes(K * D) * 4
    return window + patch + feats + assign + accs + outb + (1 << 20)


def _pick_row_tile(H, W, C_in, D, K, bt, budget):
    # TODO(synk): prime H whose single tile exceeds the budget degenerates to
    # rt=1 (a perf cliff, not a correctness issue); pad/mask rows if needed.
    for rt in range(H, 0, -1):
        if H % rt == 0 and _vmem_bytes_estimate(bt, rt, W, C_in, D, K) <= budget:
            return rt
    return 1


def netvlad_finetune_forward(img_nchw, params, *, num_clusters, dim,
                             row_tile=None, batch_tile=None):
    """img_nchw: (N, C_in, H, W) float32.  Returns {'global': (N, K*D)}."""
    N, C_in, H, W = img_nchw.shape
    K, D = num_clusters, dim

    vmem_cap = _vmem_capacity_bytes()
    bt = batch_tile if (batch_tile and N % batch_tile == 0) else _pick_batch_tile(N)
    if row_tile is not None and H % row_tile == 0:
        rt = row_tile
    else:
        rt = _pick_row_tile(H, W, C_in, D, K, bt, budget=int(0.40 * vmem_cap))
    T = H // rt
    W2 = W + 2
    P = bt * rt * W

    # Single fused pad + NCHW->NHWC transpose + bf16 cast (one HBM pass).  No
    # overlapping-window stack: halo rows are re-read through extra BlockSpec
    # views of this same array.
    xpad = jnp.pad(jnp.transpose(img_nchw, (0, 2, 3, 1)),
                   ((0, 0), (1, 1), (1, 1), (0, 0))).astype(jnp.bfloat16)

    # conv weight (D, C_in, 3, 3) -> (3, 3, C_in, D) -> (9*C_in, D) (im2col order)
    wconv = jnp.transpose(params["conv_w"], (2, 3, 1, 0)).reshape(
        9 * C_in, D).astype(jnp.bfloat16)
    bconv = params["conv_b"].reshape(1, D).astype(jnp.float32)
    wassign = params["assign_w"].reshape(K, D).T.astype(jnp.bfloat16)
    bassign = params["assign_b"].reshape(1, K).astype(jnp.float32)
    cent = params["centroids"].astype(jnp.float32)

    kernel = functools.partial(_netvlad_kernel, bt=bt, rt=rt, w=W, c_in=C_in,
                               nk=K, d=D)

    out = pl.pallas_call(
        kernel,
        out_shape=jax.ShapeDtypeStruct((N, 1, K * D), jnp.float32),
        grid_spec=pltpu.PrefetchScalarGridSpec(
            num_scalar_prefetch=0,
            grid=(N // bt, T),
            in_specs=[
                # center rows [t*rt, t*rt + rt) of the padded image
                pl.BlockSpec((bt, rt, W2, C_in), lambda n, t: (n, t, 0, 0)),
                # 2-row bottom halo (1-row blocks -> block index == row index)
                pl.BlockSpec((bt, 1, W2, C_in),
                             lambda n, t: (n, (t + 1) * rt, 0, 0)),
                pl.BlockSpec((bt, 1, W2, C_in),
                             lambda n, t: (n, (t + 1) * rt + 1, 0, 0)),
                pl.BlockSpec((9 * C_in, D), lambda n, t: (0, 0)),
                pl.BlockSpec((1, D), lambda n, t: (0, 0)),
                pl.BlockSpec((D, K), lambda n, t: (0, 0)),
                pl.BlockSpec((1, K), lambda n, t: (0, 0)),
                pl.BlockSpec((K, D), lambda n, t: (0, 0)),
            ],
            out_specs=pl.BlockSpec((bt, 1, K * D), lambda n, t: (n, 0, 0)),
            scratch_shapes=[
                pltpu.VMEM((bt, K, D), jnp.float32),
                pltpu.VMEM((bt, K, _ASUM_COLS), jnp.float32),
                pltpu.VMEM((P, 9 * C_in), jnp.bfloat16),
            ]),
        compiler_params=pltpu.CompilerParams(
            dimension_semantics=("parallel", "arbitrary"),
            vmem_limit_bytes=int(0.85 * vmem_cap)),
    )(xpad, xpad, xpad, wconv, bconv, wassign, bassign, cent)

    return {"global": out.reshape(N, K * D)}


# ----------------------------------------------------------------------------
# Pure-JAX f32 reference (same forward pass) + demo / validation.
# ----------------------------------------------------------------------------
def _reference_forward(img_nchw, params, *, num_clusters, dim):
    N, C_in, H, W = img_nchw.shape
    x = jnp.transpose(img_nchw, (0, 2, 3, 1))
    xp = jnp.pad(x, ((0, 0), (1, 1), (1, 1), (0, 0)))
    wtap = jnp.transpose(params["conv_w"], (2, 3, 1, 0))           # (3,3,C,D)
    feat = jnp.zeros((N, H, W, dim), jnp.float32)
    for dy in range(3):
        for dx in range(3):
            feat = feat + jnp.einsum("nhwc,cd->nhwd",
                                     xp[:, dy:dy + H, dx:dx + W, :], wtap[dy, dx])
    feat = jnp.maximum(feat + params["conv_b"], 0.0).reshape(N, H * W, dim)
    xn = feat / jnp.maximum(jnp.linalg.norm(feat, axis=-1, keepdims=True), EPS)
    logits = xn @ params["assign_w"].reshape(num_clusters, dim).T + params["assign_b"]
    a = jax.nn.softmax(logits, axis=-1)
    S = jnp.einsum("npk,npd->nkd", a, xn)
    vlad = S - params["centroids"][None] * jnp.sum(a, axis=1)[:, :, None]
    vlad = vlad / jnp.maximum(jnp.linalg.norm(vlad, axis=-1, keepdims=True), EPS)
    flat = vlad.reshape(N, num_clusters * dim)
    return flat / jnp.maximum(jnp.linalg.norm(flat, axis=-1, keepdims=True), EPS)


def init_params(key, c_in, dim, num_clusters):
    ks = jax.random.split(key, 5)
    return {
        "conv_w": 0.1 * jax.random.normal(ks[0], (dim, c_in, 3, 3), jnp.float32),
        "conv_b": 0.01 * jax.random.normal(ks[1], (dim,), jnp.float32),
        "assign_w": 0.1 * jax.random.normal(ks[2], (num_clusters, dim, 1, 1),
                                            jnp.float32),
        "assign_b": 0.01 * jax.random.normal(ks[3], (num_clusters,), jnp.float32),
        "centroids": jax.random.uniform(ks[4], (num_clusters, dim), jnp.float32),
    }


if __name__ == "__main__":
    # small shapes consistent with the module: batch=2, C_in=4, 16x16 spatial,
    # encoder dim D=32, K=8 clusters -> global descriptor of size 256.
    N, C_in, H, W = 2, 4, 16, 16
    D, K = 32, 8

    key = jax.random.PRNGKey(0)
    k_img, k_par = jax.random.split(key)
    img = jax.random.normal(k_img, (N, C_in, H, W), jnp.float32)
    params = init_params(k_par, C_in, D, K)

    g_ref = _reference_forward(img, params, num_clusters=K, dim=D)

    # row_tile=8 exercises the streaming row-tile accumulation path (T=2).
    out = netvlad_finetune_forward(img, params, num_clusters=K, dim=D, row_tile=8)
    g = jax.block_until_ready(out["global"])
    assert g.shape == (N, K * D), g.shape
    assert bool(jnp.all(jnp.isfinite(g)))
    assert bool(jnp.allclose(jnp.linalg.norm(g, axis=-1), 1.0, atol=1e-3))
    cos = jnp.sum(g * g_ref, axis=-1)
    assert bool(jnp.all(cos > 0.99)), cos

    # auto-selected tiles (single row tile, T=1) must agree as well.
    out2 = netvlad_finetune_forward(img, params, num_clusters=K, dim=D)
    g2 = jax.block_until_ready(out2["global"])
    cos2 = jnp.sum(g2 * g_ref, axis=-1)
    assert bool(jnp.all(cos2 > 0.99)), cos2

    print("KERNEL_OK")
</pallas_src>

<mosaic_0001>
module attributes {stable_mosaic.version = 11 : i64} {
  func.func @_netvlad_kernel(%arg0: i32, %arg1: i32, %arg2: memref<1x8x18x4xbf16, #tpu.memory_space<vmem>>, %arg3: memref<1x1x18x4xbf16, #tpu.memory_space<vmem>>, %arg4: memref<1x1x18x4xbf16, #tpu.memory_space<vmem>>, %arg5: memref<36x32xbf16, #tpu.memory_space<vmem>>, %arg6: memref<1x32xf32, #tpu.memory_space<vmem>>, %arg7: memref<32x8xbf16, #tpu.memory_space<vmem>>, %arg8: memref<1x8xf32, #tpu.memory_space<vmem>>, %arg9: memref<8x32xf32, #tpu.memory_space<vmem>>, %arg10: memref<1x1x256xf32, #tpu.memory_space<vmem>>, %arg11: memref<1x8x32xf32, #tpu.memory_space<vmem>>, %arg12: memref<1x8x8xf32, #tpu.memory_space<vmem>>, %arg13: memref<128x36xbf16, #tpu.memory_space<vmem>>) attributes {dimension_semantics = [#tpu.dimension_semantics<parallel>, #tpu.dimension_semantics<arbitrary>], iteration_bounds = array<i64: 2, 2>, scalar_prefetch = 0 : i64, scratch_operands = 3 : i64, tpu.core_type = #tpu.core_type<tc>, window_params = [{transform_indices = @transform_0, window_bounds = array<i64: 1, 8, 18, 4>}, {transform_indices = @transform_1, window_bounds = array<i64: 1, 1, 18, 4>}, {transform_indices = @transform_2, window_bounds = array<i64: 1, 1, 18, 4>}, {pipeline_mode = #tpu.pipeline_mode<synchronous>, transform_indices = @transform_3, window_bounds = array<i64: 36, 32>}, {pipeline_mode = #tpu.pipeline_mode<synchronous>, transform_indices = @transform_4, window_bounds = array<i64: 1, 32>}, {pipeline_mode = #tpu.pipeline_mode<synchronous>, transform_indices = @transform_5, window_bounds = array<i64: 32, 8>}, {pipeline_mode = #tpu.pipeline_mode<synchronous>, transform_indices = @transform_6, window_bounds = array<i64: 1, 8>}, {pipeline_mode = #tpu.pipeline_mode<synchronous>, transform_indices = @transform_7, window_bounds = array<i64: 8, 32>}, {transform_indices = @transform_8, window_bounds = array<i64: 1, 1, 256>}]} {
    %c0_i32 = arith.constant 0 : i32
    %0 = arith.cmpi eq, %arg1, %c0_i32 : i32
    %1 = arith.extui %0 : i1 to i32
    %c0_i32_0 = arith.constant 0 : i32
    %2 = arith.cmpi ne, %1, %c0_i32_0 : i32
    scf.if %2 {
      %cst_54 = arith.constant 0.000000e+00 : f32
      %83 = vector.broadcast %cst_54 : f32 to vector<1x8x32xf32>
      %c0_55 = arith.constant 0 : index
      %c0_56 = arith.constant 0 : index
      %c0_57 = arith.constant 0 : index
      %84 = vector.load %arg11[%c0_55, %c0_56, %c0_57] : memref<1x8x32xf32, #tpu.memory_space<vmem>>, vector<1x8x32xf32>
      tpu.vector_store %arg11[%c0_55, %c0_56, %c0_57], %83 {strides = array<i32>} : memref<1x8x32xf32, #tpu.memory_space<vmem>>, vector<1x8x32xf32>,
      %cst_58 = arith.constant 0.000000e+00 : f32
      %85 = vector.broadcast %cst_58 : f32 to vector<1x8x8xf32>
      %c0_59 = arith.constant 0 : index
      %c0_60 = arith.constant 0 : index
      %c0_61 = arith.constant 0 : index
      %86 = vector.load %arg12[%c0_59, %c0_60, %c0_61] : memref<1x8x8xf32, #tpu.memory_space<vmem>>, vector<1x8x8xf32>
      tpu.vector_store %arg12[%c0_59, %c0_60, %c0_61], %85 {strides = array<i32>} : memref<1x8x8xf32, #tpu.memory_space<vmem>>, vector<1x8x8xf32>,
    } else {
    }
    %c0 = arith.constant 0 : index
    %c0_1 = arith.constant 0 : index
    %c0_2 = arith.constant 0 : index
    %c0_3 = arith.constant 0 : index
    %3 = vector.load %arg2[%c0, %c0_1, %c0_2, %c0_3] : memref<1x8x18x4xbf16, #tpu.memory_space<vmem>>, vector<1x8x18x4xbf16>
    %c0_4 = arith.constant 0 : index
    %c0_5 = arith.constant 0 : index
    %c0_6 = arith.constant 0 : index
    %c0_7 = arith.constant 0 : index
    %4 = vector.load %arg3[%c0_4, %c0_5, %c0_6, %c0_7] : memref<1x1x18x4xbf16, #tpu.memory_space<vmem>>, vector<1x1x18x4xbf16>
    %c0_8 = arith.constant 0 : index
    %c0_9 = arith.constant 0 : index
    %c0_10 = arith.constant 0 : index
    %c0_11 = arith.constant 0 : index
    %5 = vector.load %arg4[%c0_8, %c0_9, %c0_10, %c0_11] : memref<1x1x18x4xbf16, #tpu.memory_space<vmem>>, vector<1x1x18x4xbf16>
    %6 = tpu.concatenate %3, %4, %5 in 1 : vector<1x8x18x4xbf16>, vector<1x1x18x4xbf16>, vector<1x1x18x4xbf16> -> vector<1x10x18x4xbf16>
    %7 = vector.extract_strided_slice %6 {offsets = [0, 0, 0, 0], sizes = [1, 10, 16, 4], strides = [1, 1, 1, 1]} : vector<1x10x18x4xbf16> to vector<1x10x16x4xbf16>
    %8 = vector.extract_strided_slice %7 {offsets = [0, 0, 0, 0], sizes = [1, 8, 16, 4], strides = [1, 1, 1, 1]} : vector<1x10x16x4xbf16> to vector<1x8x16x4xbf16>
    %9 = vector.shape_cast %8 : vector<1x8x16x4xbf16> to vector<128x4xbf16>
    %c0_12 = arith.constant 0 : index
    %c0_13 = arith.constant 0 : index
    %10 = vector.load %arg13[%c0_12, %c0_13] : memref<128x36xbf16, #tpu.memory_space<vmem>>, vector<128x4xbf16>
    tpu.vector_store %arg13[%c0_12, %c0_13], %9 {strides = array<i32>} : memref<128x36xbf16, #tpu.memory_space<vmem>>, vector<128x4xbf16>,
    %11 = vector.extract_strided_slice %7 {offsets = [0, 1, 0, 0], sizes = [1, 8, 16, 4], strides = [1, 1, 1, 1]} : vector<1x10x16x4xbf16> to vector<1x8x16x4xbf16>
    %12 = vector.shape_cast %11 : vector<1x8x16x4xbf16> to vector<128x4xbf16>
    %c0_14 = arith.constant 0 : index
    %c12 = arith.constant 12 : index
    %13 = vector.load %arg13[%c0_14, %c12] : memref<128x36xbf16, #tpu.memory_space<vmem>>, vector<128x4xbf16>
    tpu.vector_store %arg13[%c0_14, %c12], %12 {strides = array<i32>} : memref<128x36xbf16, #tpu.memory_space<vmem>>, vector<128x4xbf16>,
    %14 = vector.extract_strided_slice %7 {offsets = [0, 2, 0, 0], sizes = [1, 8, 16, 4], strides = [1, 1, 1, 1]} : vector<1x10x16x4xbf16> to vector<1x8x16x4xbf16>
    %15 = vector.shape_cast %14 : vector<1x8x16x4xbf16> to vector<128x4xbf16>
    %c0_15 = arith.constant 0 : index
    %c24 = arith.constant 24 : index
    %16 = vector.load %arg13[%c0_15, %c24] : memref<128x36xbf16, #tpu.memory_space<vmem>>, vector<128x4xbf16>
    tpu.vector_store %arg13[%c0_15, %c24], %15 {strides = array<i32>} : memref<128x36xbf16, #tpu.memory_space<vmem>>, vector<128x4xbf16>,
    %17 = vector.extract_strided_slice %6 {offsets = [0, 0, 1, 0], sizes = [1, 10, 16, 4], strides = [1, 1, 1, 1]} : vector<1x10x18x4xbf16> to vector<1x10x16x4xbf16>
    %18 = vector.extract_strided_slice %17 {offsets = [0, 0, 0, 0], sizes = [1, 8, 16, 4], strides = [1, 1, 1, 1]} : vector<1x10x16x4xbf16> to vector<1x8x16x4xbf16>
    %19 = vector.shape_cast %18 : vector<1x8x16x4xbf16> to vector<128x4xbf16>
    %c0_16 = arith.constant 0 : index
    %c4 = arith.constant 4 : index
    %20 = vector.load %arg13[%c0_16, %c4] : memref<128x36xbf16, #tpu.memory_space<vmem>>, vector<128x4xbf16>
    tpu.vector_store %arg13[%c0_16, %c4], %19 {strides = array<i32>} : memref<128x36xbf16, #tpu.memory_space<vmem>>, vector<128x4xbf16>,
    %21 = vector.extract_strided_slice %17 {offsets = [0, 1, 0, 0], sizes = [1, 8, 16, 4], strides = [1, 1, 1, 1]} : vector<1x10x16x4xbf16> to vector<1x8x16x4xbf16>
    %22 = vector.shape_cast %21 : vector<1x8x16x4xbf16> to vector<128x4xbf16>
    %c0_17 = arith.constant 0 : index
    %c16 = arith.constant 16 : index
    %23 = vector.load %arg13[%c0_17, %c16] : memref<128x36xbf16, #tpu.memory_space<vmem>>, vector<128x4xbf16>
    tpu.vector_store %arg13[%c0_17, %c16], %22 {strides = array<i32>} : memref<128x36xbf16, #tpu.memory_space<vmem>>, vector<128x4xbf16>,
    %24 = vector.extract_strided_slice %17 {offsets = [0, 2, 0, 0], sizes = [1, 8, 16, 4], strides = [1, 1, 1, 1]} : vector<1x10x16x4xbf16> to vector<1x8x16x4xbf16>
    %25 = vector.shape_cast %24 : vector<1x8x16x4xbf16> to vector<128x4xbf16>
    %c0_18 = arith.constant 0 : index
    %c28 = arith.constant 28 : index
    %26 = vector.load %arg13[%c0_18, %c28] : memref<128x36xbf16, #tpu.memory_space<vmem>>, vector<128x4xbf16>
    tpu.vector_store %arg13[%c0_18, %c28], %25 {strides = array<i32>} : memref<128x36xbf16, #tpu.memory_space<vmem>>, vector<128x4xbf16>,
    %27 = vector.extract_strided_slice %6 {offsets = [0, 0, 2, 0], sizes = [1, 10, 16, 4], strides = [1, 1, 1, 1]} : vector<1x10x18x4xbf16> to vector<1x10x16x4xbf16>
    %28 = vector.extract_strided_slice %27 {offsets = [0, 0, 0, 0], sizes = [1, 8, 16, 4], strides = [1, 1, 1, 1]} : vector<1x10x16x4xbf16> to vector<1x8x16x4xbf16>
    %29 = vector.shape_cast %28 : vector<1x8x16x4xbf16> to vector<128x4xbf16>
    %c0_19 = arith.constant 0 : index
    %c8 = arith.constant 8 : index
    %30 = vector.load %arg13[%c0_19, %c8] : memref<128x36xbf16, #tpu.memory_space<vmem>>, vector<128x4xbf16>
    tpu.vector_store %arg13[%c0_19, %c8], %29 {strides = array<i32>} : memref<128x36xbf16, #tpu.memory_space<vmem>>, vector<128x4xbf16>,
    %31 = vector.extract_strided_slice %27 {offsets = [0, 1, 0, 0], sizes = [1, 8, 16, 4], strides = [1, 1, 1, 1]} : vector<1x10x16x4xbf16> to vector<1x8x16x4xbf16>
    %32 = vector.shape_cast %31 : vector<1x8x16x4xbf16> to vector<128x4xbf16>
    %c0_20 = arith.constant 0 : index
    %c20 = arith.constant 20 : index
    %33 = vector.load %arg13[%c0_20, %c20] : memref<128x36xbf16, #tpu.memory_space<vmem>>, vector<128x4xbf16>
    tpu.vector_store %arg13[%c0_20, %c20], %32 {strides = array<i32>} : memref<128x36xbf16, #tpu.memory_space<vmem>>, vector<128x4xbf16>,
    %34 = vector.extract_strided_slice %27 {offsets = [0, 2, 0, 0], sizes = [1, 8, 16, 4], strides = [1, 1, 1, 1]} : vector<1x10x16x4xbf16> to vector<1x8x16x4xbf16>
    %35 = vector.shape_cast %34 : vector<1x8x16x4xbf16> to vector<128x4xbf16>
    %c0_21 = arith.constant 0 : index
    %c32 = arith.constant 32 : index
    %36 = vector.load %arg13[%c0_21, %c32] : memref<128x36xbf16, #tpu.memory_space<vmem>>, vector<128x4xbf16>
    tpu.vector_store %arg13[%c0_21, %c32], %35 {strides = array<i32>} : memref<128x36xbf16, #tpu.memory_space<vmem>>, vector<128x4xbf16>,
    %c0_22 = arith.constant 0 : index
    %c0_23 = arith.constant 0 : index
    %37 = vector.load %arg13[%c0_22, %c0_23] : memref<128x36xbf16, #tpu.memory_space<vmem>>, vector<128x36xbf16>
    %c0_24 = arith.constant 0 : index
    %c0_25 = arith.constant 0 : index
    %38 = vector.load %arg5[%c0_24, %c0_25] : memref<36x32xbf16, #tpu.memory_space<vmem>>, vector<36x32xbf16>
    %cst = arith.constant dense<0.000000e+00> : vector<128x32xf32>
    %39 = tpu.matmul %37, %38, %cst {dimension_numbers = #tpu.dot_dimension_numbers<[1], [0], [0], [1], [0, 0, 1, 1], [], []>} : vector<128x36xbf16>, vector<36x32xbf16>, vector<128x32xf32> -> vector<128x32xf32>
    %c0_26 = arith.constant 0 : index
    %c0_27 = arith.constant 0 : index
    %40 = vector.load %arg6[%c0_26, %c0_27] : memref<1x32xf32, #tpu.memory_space<vmem>>, vector<1x32xf32>
    %41 = vector.broadcast %40 : vector<1x32xf32> to vector<128x32xf32>
    %42 = arith.addf %39, %41 : vector<128x32xf32>
    %cst_28 = arith.constant 0.000000e+00 : f32
    %43 = vector.broadcast %cst_28 : f32 to vector<128x32xf32>
    %44 = arith.maximumf %42, %43 : vector<128x32xf32>
    %45 = arith.mulf %44, %44 : vector<128x32xf32>
    %cst_29 = arith.constant dense<0.000000e+00> : vector<128xf32>
    %46 = vector.multi_reduction <add>, %45, %cst_29 [1] : vector<128x32xf32> to vector<128xf32>
    %47 = vector.shape_cast %46 : vector<128xf32> to vector<128x1xf32>
    %cst_30 = arith.constant 1.000000e-24 : f32
    %48 = vector.broadcast %cst_30 : f32 to vector<128x1xf32>
    %49 = arith.maximumf %47, %48 : vector<128x1xf32>
    %50 = math.rsqrt %49 : vector<128x1xf32>
    %51 = vector.broadcast %50 : vector<128x1xf32> to vector<128x32xf32>
    %52 = arith.mulf %44, %51 : vector<128x32xf32>
    %53 = arith.truncf %52 : vector<128x32xf32> to vector<128x32xbf16>
    %c0_31 = arith.constant 0 : index
    %c0_32 = arith.constant 0 : index
    %54 = vector.load %arg7[%c0_31, %c0_32] : memref<32x8xbf16, #tpu.memory_space<vmem>>, vector<32x8xbf16>
    %cst_33 = arith.constant dense<0.000000e+00> : vector<128x8xf32>
    %55 = tpu.matmul %53, %54, %cst_33 {dimension_numbers = #tpu.dot_dimension_numbers<[1], [0], [0], [1], [0, 0, 1, 1], [], []>} : vector<128x32xbf16>, vector<32x8xbf16>, vector<128x8xf32> -> vector<128x8xf32>
    %c0_34 = arith.constant 0 : index
    %c0_35 = arith.constant 0 : index
    %56 = vector.load %arg8[%c0_34, %c0_35] : memref<1x8xf32, #tpu.memory_space<vmem>>, vector<1x8xf32>
    %57 = vector.broadcast %56 : vector<1x8xf32> to vector<128x8xf32>
    %58 = arith.addf %55, %57 : vector<128x8xf32>
    %cst_36 = arith.constant dense<0xFF800000> : vector<128xf32>
    %59 = vector.multi_reduction <maximumf>, %58, %cst_36 [1] : vector<128x8xf32> to vector<128xf32>
    %60 = vector.shape_cast %59 : vector<128xf32> to vector<128x1xf32>
    %61 = vector.broadcast %60 : vector<128x1xf32> to vector<128x8xf32>
    %62 = arith.subf %58, %61 : vector<128x8xf32>
    %63 = math.exp %62 : vector<128x8xf32>
    %cst_37 = arith.constant dense<0.000000e+00> : vector<128xf32>
    %64 = vector.multi_reduction <add>, %63, %cst_37 [1] : vector<128x8xf32> to vector<128xf32>
    %65 = vector.shape_cast %64 : vector<128xf32> to vector<128x1xf32>
    %66 = vector.broadcast %65 : vector<128x1xf32> to vector<128x8xf32>
    %67 = arith.divf %63, %66 : vector<128x8xf32>
    %68 = arith.truncf %67 : vector<128x8xf32> to vector<128x8xbf16>
    %69 = vector.shape_cast %68 : vector<128x8xbf16> to vector<1x128x8xbf16>
    %70 = vector.shape_cast %53 : vector<128x32xbf16> to vector<1x128x32xbf16>
    %c0_38 = arith.constant 0 : index
    %c0_39 = arith.constant 0 : index
    %c0_40 = arith.constant 0 : index
    %71 = vector.load %arg11[%c0_38, %c0_39, %c0_40] : memref<1x8x32xf32, #tpu.memory_space<vmem>>, vector<1x8x32xf32>
    %cst_41 = arith.constant dense<0.000000e+00> : vector<1x8x32xf32>
    %72 = tpu.matmul %69, %70, %cst_41 {dimension_numbers = #tpu.dot_dimension_numbers<[1], [1], [2], [2], [0, 0, 0, 2, 1, 2], [0], [0]>} : vector<1x128x8xbf16>, vector<1x128x32xbf16>, vector<1x8x32xf32> -> vector<1x8x32xf32>
    %73 = arith.addf %71, %72 : vector<1x8x32xf32>
    %c0_42 = arith.constant 0 : index
    %c0_43 = arith.constant 0 : index
    %c0_44 = arith.constant 0 : index
    %74 = vector.load %arg11[%c0_42, %c0_43, %c0_44] : memref<1x8x32xf32, #tpu.memory_space<vmem>>, vector<1x8x32xf32>
    tpu.vector_store %arg11[%c0_42, %c0_43, %c0_44], %73 {strides = array<i32>} : memref<1x8x32xf32, #tpu.memory_space<vmem>>, vector<1x8x32xf32>,
    %cst_45 = arith.constant 1.000000e+00 : bf16
    %75 = vector.broadcast %cst_45 : bf16 to vector<1x128x8xbf16>
    %c0_46 = arith.constant 0 : index
    %c0_47 = arith.constant 0 : index
    %c0_48 = arith.constant 0 : index
    %76 = vector.load %arg12[%c0_46, %c0_47, %c0_48] : memref<1x8x8xf32, #tpu.memory_space<vmem>>, vector<1x8x8xf32>
    %cst_49 = arith.constant dense<0.000000e+00> : vector<1x8x8xf32>
    %77 = tpu.matmul %69, %75, %cst_49 {dimension_numbers = #tpu.dot_dimension_numbers<[1], [1], [2], [2], [0, 0, 0, 2, 1, 2], [0], [0]>} : vector<1x128x8xbf16>, vector<1x128x8xbf16>, vector<1x8x8xf32> -> vector<1x8x8xf32>
    %78 = arith.addf %76, %77 : vector<1x8x8xf32>
    %c0_50 = arith.constant 0 : index
    %c0_51 = arith.constant 0 : index
    %c0_52 = arith.constant 0 : index
    %79 = vector.load %arg12[%c0_50, %c0_51, %c0_52] : memref<1x8x8xf32, #tpu.memory_space<vmem>>, vector<1x8x8xf32>
    tpu.vector_store %arg12[%c0_50, %c0_51, %c0_52], %78 {strides = array<i32>} : memref<1x8x8xf32, #tpu.memory_space<vmem>>, vector<1x8x8xf32>,
    %c1_i32 = arith.constant 1 : i32
    %80 = arith.cmpi eq, %arg1, %c1_i32 : i32
    %81 = arith.extui %80 : i1 to i32
    %c0_i32_53 = arith.constant 0 : i32
    %82 = arith.cmpi ne, %81, %c0_i32_53 : i32
    scf.if %82 {
      %c0_54 = arith.constant 0 : index
      %c0_55 = arith.constant 0 : index
      %c0_56 = arith.constant 0 : index
      %83 = vector.load %arg12[%c0_54, %c0_55, %c0_56] : memref<1x8x8xf32, #tpu.memory_space<vmem>>, vector<1x8x8xf32>
      %84 = vector.extract_strided_slice %83 {offsets = [0, 0, 0], sizes = [1, 8, 1], strides = [1, 1, 1]} : vector<1x8x8xf32> to vector<1x8x1xf32>
      %c0_57 = arith.constant 0 : index
      %c0_58 = arith.constant 0 : index
      %c0_59 = arith.constant 0 : index
      %85 = vector.load %arg11[%c0_57, %c0_58, %c0_59] : memref<1x8x32xf32, #tpu.memory_space<vmem>>, vector<1x8x32xf32>
      %c0_60 = arith.constant 0 : index
      %c0_61 = arith.constant 0 : index
      %86 = vector.load %arg9[%c0_60, %c0_61] : memref<8x32xf32, #tpu.memory_space<vmem>>, vector<8x32xf32>
      %87 = vector.shape_cast %86 : vector<8x32xf32> to vector<1x8x32xf32>
      %88 = vector.broadcast %84 : vector<1x8x1xf32> to vector<1x8x32xf32>
      %89 = arith.mulf %87, %88 : vector<1x8x32xf32>
      %90 = arith.subf %85, %89 : vector<1x8x32xf32>
      %91 = arith.mulf %90, %90 : vector<1x8x32xf32>
      %cst_62 = arith.constant dense<0.000000e+00> : vector<1x8xf32>
      %92 = vector.multi_reduction <add>, %91, %cst_62 [2] : vector<1x8x32xf32> to vector<1x8xf32>
      %93 = vector.shape_cast %92 : vector<1x8xf32> to vector<1x8x1xf32>
      %cst_63 = arith.constant 1.000000e-24 : f32
      %94 = vector.broadcast %cst_63 : f32 to vector<1x8x1xf32>
      %95 = arith.maximumf %93, %94 : vector<1x8x1xf32>
      %96 = math.rsqrt %95 : vector<1x8x1xf32>
      %97 = vector.broadcast %96 : vector<1x8x1xf32> to vector<1x8x32xf32>
      %98 = arith.mulf %90, %97 : vector<1x8x32xf32>
      %99 = arith.mulf %98, %98 : vector<1x8x32xf32>
      %cst_64 = arith.constant dense<0.000000e+00> : vector<1xf32>
      %100 = vector.multi_reduction <add>, %99, %cst_64 [1, 2] : vector<1x8x32xf32> to vector<1xf32>
      %101 = vector.shape_cast %100 : vector<1xf32> to vector<1x1x1xf32>
      %cst_65 = arith.constant 1.000000e-24 : f32
      %102 = vector.broadcast %cst_65 : f32 to vector<1x1x1xf32>
      %103 = arith.maximumf %101, %102 : vector<1x1x1xf32>
      %104 = math.rsqrt %103 : vector<1x1x1xf32>
      %105 = vector.broadcast %104 : vector<1x1x1xf32> to vector<1x8x32xf32>
      %106 = arith.mulf %98, %105 : vector<1x8x32xf32>
      %107 = vector.extract_strided_slice %106 {offsets = [0, 0, 0], sizes = [1, 1, 32], strides = [1, 1, 1]} : vector<1x8x32xf32> to vector<1x1x32xf32>
      %c0_66 = arith.constant 0 : index
      %c0_67 = arith.constant 0 : index
      %c0_68 = arith.constant 0 : index
      %108 = vector.load %arg10[%c0_66, %c0_67, %c0_68] : memref<1x1x256xf32, #tpu.memory_space<vmem>>, vector<1x1x32xf32>
      tpu.vector_store %arg10[%c0_66, %c0_67, %c0_68], %107 {strides = array<i32>} : memref<1x1x256xf32, #tpu.memory_space<vmem>>, vector<1x1x32xf32>,
      %109 = vector.extract_strided_slice %106 {offsets = [0, 1, 0], sizes = [1, 1, 32], strides = [1, 1, 1]} : vector<1x8x32xf32> to vector<1x1x32xf32>
      %c0_69 = arith.constant 0 : index
      %c0_70 = arith.constant 0 : index
      %c32_71 = arith.constant 32 : index
      %110 = vector.load %arg10[%c0_69, %c0_70, %c32_71] : memref<1x1x256xf32, #tpu.memory_space<vmem>>, vector<1x1x32xf32>
      tpu.vector_store %arg10[%c0_69, %c0_70, %c32_71], %109 {strides = array<i32>} : memref<1x1x256xf32, #tpu.memory_space<vmem>>, vector<1x1x32xf32>,
      %111 = vector.extract_strided_slice %106 {offsets = [0, 2, 0], sizes = [1, 1, 32], strides = [1, 1, 1]} : vector<1x8x32xf32> to vector<1x1x32xf32>
      %c0_72 = arith.constant 0 : index
      %c0_73 = arith.constant 0 : index
      %c64 = arith.constant 64 : index
      %112 = vector.load %arg10[%c0_72, %c0_73, %c64] : memref<1x1x256xf32, #tpu.memory_space<vmem>>, vector<1x1x32xf32>
      tpu.vector_store %arg10[%c0_72, %c0_73, %c64], %111 {strides = array<i32>} : memref<1x1x256xf32, #tpu.memory_space<vmem>>, vector<1x1x32xf32>,
      %113 = vector.extract_strided_slice %106 {offsets = [0, 3, 0], sizes = [1, 1, 32], strides = [1, 1, 1]} : vector<1x8x32xf32> to vector<1x1x32xf32>
      %c0_74 = arith.constant 0 : index
      %c0_75 = arith.constant 0 : index
      %c96 = arith.constant 96 : index
      %114 = vector.load %arg10[%c0_74, %c0_75, %c96] : memref<1x1x256xf32, #tpu.memory_space<vmem>>, vector<1x1x32xf32>
      tpu.vector_store %arg10[%c0_74, %c0_75, %c96], %113 {strides = array<i32>} : memref<1x1x256xf32, #tpu.memory_space<vmem>>, vector<1x1x32xf32>,
      %115 = vector.extract_strided_slice %106 {offsets = [0, 4, 0], sizes = [1, 1, 32], strides = [1, 1, 1]} : vector<1x8x32xf32> to vector<1x1x32xf32>
      %c0_76 = arith.constant 0 : index
      %c0_77 = arith.constant 0 : index
      %c128 = arith.constant 128 : index
      %116 = vector.load %arg10[%c0_76, %c0_77, %c128] : memref<1x1x256xf32, #tpu.memory_space<vmem>>, vector<1x1x32xf32>
      tpu.vector_store %arg10[%c0_76, %c0_77, %c128], %115 {strides = array<i32>} : memref<1x1x256xf32, #tpu.memory_space<vmem>>, vector<1x1x32xf32>,
      %117 = vector.extract_strided_slice %106 {offsets = [0, 5, 0], sizes = [1, 1, 32], strides = [1, 1, 1]} : vector<1x8x32xf32> to vector<1x1x32xf32>
      %c0_78 = arith.constant 0 : index
      %c0_79 = arith.constant 0 : index
      %c160 = arith.constant 160 : index
      %118 = vector.load %arg10[%c0_78, %c0_79, %c160] : memref<1x1x256xf32, #tpu.memory_space<vmem>>, vector<1x1x32xf32>
      tpu.vector_store %arg10[%c0_78, %c0_79, %c160], %117 {strides = array<i32>} : memref<1x1x256xf32, #tpu.memory_space<vmem>>, vector<1x1x32xf32>,
      %119 = vector.extract_strided_slice %106 {offsets = [0, 6, 0], sizes = [1, 1, 32], strides = [1, 1, 1]} : vector<1x8x32xf32> to vector<1x1x32xf32>
      %c0_80 = arith.constant 0 : index
      %c0_81 = arith.constant 0 : index
      %c192 = arith.constant 192 : index
      %120 = vector.load %arg10[%c0_80, %c0_81, %c192] : memref<1x1x256xf32, #tpu.memory_space<vmem>>, vector<1x1x32xf32>
      tpu.vector_store %arg10[%c0_80, %c0_81, %c192], %119 {strides = array<i32>} : memref<1x1x256xf32, #tpu.memory_space<vmem>>, vector<1x1x32xf32>,
      %121 = vector.extract_strided_slice %106 {offsets = [0, 7, 0], sizes = [1, 1, 32], strides = [1, 1, 1]} : vector<1x8x32xf32> to vector<1x1x32xf32>
      %c0_82 = arith.constant 0 : index
      %c0_83 = arith.constant 0 : index
      %c224 = arith.constant 224 : index
      %122 = vector.load %arg10[%c0_82, %c0_83, %c224] : memref<1x1x256xf32, #tpu.memory_space<vmem>>, vector<1x1x32xf32>
      tpu.vector_store %arg10[%c0_82, %c0_83, %c224], %121 {strides = array<i32>} : memref<1x1x256xf32, #tpu.memory_space<vmem>>, vector<1x1x32xf32>,
    } else {
    }
    return
  }
  func.func @transform_0(%arg0: i32, %arg1: i32) -> (i32, i32, i32, i32) {
    %c0_i32 = arith.constant 0 : i32
    %c0_i32_0 = arith.constant 0 : i32
    %c0_i32_1 = arith.constant 0 : i32
    return %arg0, %arg1, %c0_i32, %c0_i32_0 : i32, i32, i32, i32
  }
  func.func @transform_1(%arg0: i32, %arg1: i32) -> (i32, i32, i32, i32) {
    %c1_i32 = arith.constant 1 : i32
    %0 = arith.addi %arg1, %c1_i32 : i32
    %c8_i32 = arith.constant 8 : i32
    %1 = arith.muli %0, %c8_i32 : i32
    %c0_i32 = arith.constant 0 : i32
    %c0_i32_0 = arith.constant 0 : i32
    %c0_i32_1 = arith.constant 0 : i32
    return %arg0, %1, %c0_i32, %c0_i32_0 : i32, i32, i32, i32
  }
  func.func @transform_2(%arg0: i32, %arg1: i32) -> (i32, i32, i32, i32) {
    %c1_i32 = arith.constant 1 : i32
    %0 = arith.addi %arg1, %c1_i32 : i32
    %c8_i32 = arith.constant 8 : i32
    %1 = arith.muli %0, %c8_i32 : i32
    %c1_i32_0 = arith.constant 1 : i32
    %2 = arith.addi %1, %c1_i32_0 : i32
    %c0_i32 = arith.constant 0 : i32
    %c0_i32_1 = arith.constant 0 : i32
    %c0_i32_2 = arith.constant 0 : i32
    return %arg0, %2, %c0_i32, %c0_i32_1 : i32, i32, i32, i32
  }
  func.func @transform_3(%arg0: i32, %arg1: i32) -> (i32, i32) {
    %c0_i32 = arith.constant 0 : i32
    %c0_i32_0 = arith.constant 0 : i32
    %c0_i32_1 = arith.constant 0 : i32
    return %c0_i32, %c0_i32_0 : i32, i32
  }
  func.func @transform_4(%arg0: i32, %arg1: i32) -> (i32, i32) {
    %c0_i32 = arith.constant 0 : i32
    %c0_i32_0 = arith.constant 0 : i32
    %c0_i32_1 = arith.constant 0 : i32
    return %c0_i32, %c0_i32_0 : i32, i32
  }
  func.func @transform_5(%arg0: i32, %arg1: i32) -> (i32, i32) {
    %c0_i32 = arith.constant 0 : i32
    %c0_i32_0 = arith.constant 0 : i32
    %c0_i32_1 = arith.constant 0 : i32
    return %c0_i32, %c0_i32_0 : i32, i32
  }
  func.func @transform_6(%arg0: i32, %arg1: i32) -> (i32, i32) {
    %c0_i32 = arith.constant 0 : i32
    %c0_i32_0 = arith.constant 0 : i32
    %c0_i32_1 = arith.constant 0 : i32
    return %c0_i32, %c0_i32_0 : i32, i32
  }
  func.func @transform_7(%arg0: i32, %arg1: i32) -> (i32, i32) {
    %c0_i32 = arith.constant 0 : i32
    %c0_i32_0 = arith.constant 0 : i32
    %c0_i32_1 = arith.constant 0 : i32
    return %c0_i32, %c0_i32_0 : i32, i32
  }
  func.func @transform_8(%arg0: i32, %arg1: i32) -> (i32, i32, i32) {
    %c0_i32 = arith.constant 0 : i32
    %c0_i32_0 = arith.constant 0 : i32
    %c0_i32_1 = arith.constant 0 : i32
    return %arg0, %c0_i32, %c0_i32_0 : i32, i32, i32
  }
}

</mosaic_0001>

<bundles_post_ra>
// kernel: tpu_custom_call.1
= control target key start
LH: loop header
LB: loop body
LE: loop exit
PB: predicated region body
PF: predicated region fallthrough
CT: control target
= control target key end

     0   :  { %s4188_s0 = inlined_call_operand.vmem [shape: bf16[2,18,18,4], index: 0, kind: input, shape index: {}]   ;;  %s4189_s1 = inlined_call_operand.vmem [shape: bf16[2,18,18,4], index: 1, kind: input, shape index: {}]   ;;  %s4190_s2 = inlined_call_operand.vmem [shape: bf16[2,18,18,4], index: 2, kind: input, shape index: {}]   ;;  %s4191_s3 = inlined_call_operand.vmem [shape: bf16[36,32], index: 3, kind: input, shape index: {}]   ;;  %s4192_s4 = inlined_call_operand.vmem [shape: f32[1,32], index: 4, kind: input, shape index: {}]   ;;  %s4193_s5 = inlined_call_operand.vmem [shape: bf16[32,8], index: 5, kind: input, shape index: {}]   ;;  %s4194_s6 = inlined_call_operand.vmem [shape: f32[1,8], index: 6, kind: input, shape index: {}]   ;;  %s4195_s7 = inlined_call_operand.vmem [shape: f32[8,32], index: 7, kind: input, shape index: {}]   ;;  %s4196_s8 = inlined_call_operand.hbm [shape: f32[2,1,256], index: 8, kind: output, shape index: {}]  }
   0x1   :  { %4209 = sst [smem:[#allocation18_spill]] %s4196_s8 }
   0x2   :  { %13 = vsyncpa [#allocation6], 0 }
   0x3   :  { %15 = vsyncpa [#allocation6 + $0x1], 0  ;;  %s2985_s27 = smov 0   ;;  %s2987_s28 = smov 0  }
   0x4   :  { %s2989_s29 = smov 0   ;;  %s2991_s30 = smov 0  }
   0x5   :  { %s2993_s9 = smov 0   ;;  %s2995_s10 = smov 0  }
   0x6   :  { %s2997_s11 = smov 0   ;;  %s2999_s12 = smov 0  }
   0x7 LB: > { %4210 = sst [smem:[#allocation8_spill]] %s2892_s27  ;;  %s2423_s13 = sadd.s32 4294967295, %s2920_s12   ;;  %s2920_s12 = sphi %s2999_s12, %s21_s12   ;;  %s2916_s11 = sphi %s2997_s11, %s4237_s11   ;;  %s2912_s10 = sphi %s2995_s10, %s4236_s10   ;;  %s2908_s9 = sphi %s2993_s9, %s4235_s9   ;;  %s2904_s30 = sphi %s2991_s30, %s4234_s30   ;;  %s2900_s29 = sphi %s2989_s29, %s4233_s29   ;;  %s2896_s28 = sphi %s2987_s28, %s4239_s28   ;;  %s2892_s27 = sphi %s2985_s27, %s4238_s27  }
   0x8   : > { %4211 = sst [smem:[#allocation9_spill]] %s2900_s29  ;;  %s2424_s14 = sadd.s32 4294967294, %s2920_s12  }
   0x9   : > { %4212 = sst [smem:[#allocation10_spill]] %s2912_s10  ;;  %s30_s15 = sadd.s32 1, %s2912_s10 }
   0xa   : > { %4213 = sst [smem:[#allocation11_spill]] %s2916_s11  ;;  %p31_p0 = scmp.ge.s32.totalorder %s30_s15, 2 }
   0xb   : > { %4214 = sst [smem:[#allocation12_spill]] %s2920_s12  ;;  %s33_s16 = sadd.s32 1, %s2916_s11 }
   0xc   : > { %p249_p1 = scmp.ne.s32.totalorder %s2900_s29, %s2896_s28  ;;  %p250_p2 = scmp.eq.s32.totalorder %s2423_s13, 3 }
   0xd   : > { %s4241_s15 = smov (%p31_p0, %s30_s15), 0  ;;  %s4243_s16 = smov (!%p31_p0, %s33_s16), %s2916_s11 }
   0xe   : > { %4215 = sst [smem:[#allocation13_spill]] %s4241_s15  ;;  %p3034_p3 = por %p250_p2, %p249_p1 }
   0xf   : > { %p255_p4 = scmp.ne.s32.totalorder %s2896_s28, %s2892_s27  ;;  %p35_p5 = scmp.ge.s32.totalorder %s4243_s16, 2 }
  0x10   : > { %s4216_s17 = scalar_select %p3034_p3, 1, 0 }
  0x11   : > { %p256_p6 = scmp.eq.s32.totalorder %s2424_s14, 3  ;;  %p2431_p7 = scmp.ge.s32.totalorder %s2920_s12, 1 }
  0x12   : > { %4217 = sst [smem:[#allocation14_spill]] %s4216_s17  ;;  %p347_p8 = scmp.lt.s32.totalorder %s2920_s12, 5 }
  0x13   : > { %s4245_s16 = smov (%p35_p5, %s4243_s16), 0  ;;  %p3044_p9 = por %p256_p6, %p255_p4 }
  0x14   : > { %4218 = sst [smem:[#allocation15_spill]] %s4245_s16  ;;  %p348_p10 = pnand %p2431_p7, %p347_p8 }
  0x15   : > { %s4219_s18 = scalar_select %p3044_p9, 1, 0 }
  0x16   : > { %s236_s19 = ssub.s32 %s2916_s11, %s4245_s16  ;;  %s239_s20 = sadd.s32 1, %s2900_s29 }
  0x17   : > { %4220 = sst [smem:[#allocation16_spill]] %s4219_s18  ;;  %p237_p11 = scmp.eq.s32.totalorder %s236_s19, 0 }
  0x18   : > { %351 = sbr.rel (%p348_p10) target bundleno = 2210 (0x8a2), region = 52  ;;  %s4200_s22 = sand.u32 (!%p348_p10), 1, %s2896_s28  }
  0x19   : > { %s3052_s21 = scalar_select %p237_p11, %s2900_s29, %s239_s20  }
  0x1a   : > { %s2433_s23 = sshll.u32 (!%p348_p10), %s2904_s30, 3  ;;  %s2432_s24 = sshll.u32 (!%p348_p10), %s4200_s22, 1 }
  0x1b   : > { %4221 = sst [smem:[#allocation17_spill]] %s3052_s21  ;;  %p420_p12 = scmp.lt.s32.totalorder (!%p348_p10), %s2908_s9, 1 }
  0x1c   : > { %p422_p13 = scmp.lt.s32.totalorder (!%p348_p10), %s2433_s23, 17  ;;  %s2496_s14 = sadd.s32 (!%p348_p10), 8, %s2433_s23 }
  0x1d   : > { %s421_s25 = scalar_select %p420_p12, %s2908_s9, 1 }
  0x1e   : > { %s423_s26 = scalar_select %p422_p13, %s2433_s23, 17 }
  0x1f   : > { %s2623_s13 = smul.u32 54, %s421_s25  ;;  %p439_p0 = scmp.lt.s32.totalorder %s2496_s14, 17 }
  0x20   : > { %s2622_s16 = smul.u32 3, %s423_s26  ;;  %s450_s19 = sadd.s32 1, %s2496_s14 }
  0x21   : > { %p453_p1 = scmp.lt.s32.totalorder %s450_s19, 17  ;;  %s4247_s14 = smov (!%p439_p0, %s2496_s14), 17 }
  0x22   : > { %s426_s20 = sadd.s32 %s2623_s13, %s2622_s16  ;;  %s2624_s22 = smul.u32 3, %s4247_s14 }
  0x23   : > { %s2434_s15 = sshll.u32 %s426_s20, 2  ;;  %s4249_s19 = smov (!%p453_p1, %s450_s19), 17 }
  0x24   : > { %s3063_s21 = scalar_lea.vmem %s4188_s0, %s2434_s15  ;;  %s2625_s29 = smul.u32 3, %s4249_s19 }
  0x25   : > { %s443_s18 = sadd.s32 %s2624_s22, %s2623_s13  ;;  %s3075_s10 = scalar_lea.vmem [#allocation5], %s2432_s24 }
  0x26   : > { %s2436_s27 = sshll.u32 %s443_s18, 2  ;;  %s457_s12 = sadd.s32 %s2625_s29, %s2623_s13 }
  0x27   : > { %s3068_s26 = scalar_lea.vmem %s4189_s1, %s2436_s27  ;;  %s2438_s16 = sshll.u32 %s457_s12, 2 }
  0x28   : > { %s3073_s17 = scalar_lea.vmem %s4190_s2, %s2438_s16  ;;  %p2439_p2 = scmp.ne.s32.totalorder %s2904_s30, 0 }
  0x2a   : > { %468 = sbr.rel (%p2439_p2) target bundleno = 50 (0x32), region = 56 }
  0x2f   : > { %vm469_vm0 = vcmask 261120   ;;  %vm471_vm1 = vcmask 64512   ;;  %v2922_v0 = vmov 0.0  }
  0x30   : > { %470 = vst.msk [vmem:[#allocation2] sm:$0xff] %vm469_vm0, %v2922_v0 }
  0x31   : > { %472 = vst.msk [vmem:[#allocation3] sm:$0xff] %vm471_vm1, %v2922_v0 }
  0x32 PF: > { %v3079_v1 = vld [vmem:[%s3063_s21 + $0x18] sm:$0xf]  ;;  %v3082_v2 = vld [vmem:[%s3063_s21 + $0xc] sm:$0xf]  ;;  %s2923_s8 = smov 12   ;;  %s2924_s27 = smov 24  }
  0x33   : > { %540 = vrot.lane.b32.xlu1 %v3079_v1, %s2923_s8  ;;  %536 = vrot.lane.b32.xlu0 %v3082_v2, %s2923_s8  ;;  %v3089_v3 = vld [vmem:[%s3063_s21 + $0x1c] sm:$0xf]  ;;  %v3092_v4 = vld [vmem:[%s3063_s21 + $0x10] sm:$0xf]  ;;  %vm668_vm2 = vsmask.f32 3328 }
  0x34   : > { %v3095_v5 = vld [vmem:[%s3063_s21 + $0x4] sm:$0xf]  ;;  %v3098_v6 = vld [vmem:[%s3063_s21 + $0x8] sm:$0x1]  ;;  %v3104_v10 = vld [vmem:[%s3063_s21] sm:$0xf] }
  0x35   : > { %v681_v7 = vshll.u32 %v3095_v5, 16  ;;  %v685_v8 = vshrl.u32 %v3095_v5, 16  ;;  %v691_v9 = vshll.u32 %v3098_v6, 16  ;;  %v672_v13 = vshrl.u32 %v3104_v10, 16  ;;  %v3113_v15 = vld [vmem:[%s3063_s21 + $0x14] sm:$0x1] }
  0x36   : > { %v675_v14 = vshll.u32 %v3104_v10, 16  ;;  %vm669_vm3 = vsmask.f32 7440  ;;  %v705_v16 = vshll.u32 %v3092_v4, 16  ;;  %v709_v17 = vshrl.u32 %v3092_v4, 16  ;;  %s2925_s29 = smov 4  }
  0x37   : > { %542 = vrot.lane.b32.xlu1 %v3089_v3, %s2923_s8  ;;  %538 = vrot.lane.b32.xlu0 %v3092_v4, %s2923_s8  ;;  %v683_v11 = vrot.slane %v681_v7, 5  ;;  %v687_v12 = vrot.slane %v685_v8, 4  ;;  %v674_v19 = vrot.slane %v672_v13, 4  ;;  %v696_v21 = vshrl.u32 %v3082_v2, 16  ;;  %v3125_v26 = vld [vmem:[%s3063_s21 + $0x28] sm:$0xf]  ;;  %vm3134_vm4 = vmor %vm668_vm2, %vm669_vm3 }
  0x38   : > { %v677_v20 = vrot.slane %v675_v14, 5  ;;  %v707_v22 = vrot.slane %v705_v16, 5  ;;  %v711_v23 = vrot.slane %v709_v17, 4  ;;  %v715_v24 = vshll.u32 %v3113_v15, 16  ;;  %v3129_v31 = vld [vmem:[%s3063_s21 + $0x24] sm:$0xf] }
  0x39   : > { %v688_v18 = vor.u32 %v687_v12, %v683_v11  ;;  %v699_v25 = vshll.u32 %v3082_v2, 16  ;;  %v693_v27 = vrot.slane %v691_v9, 5  ;;  %v698_v29 = vrot.slane %v696_v21, 4  ;;  %v3144_v42 = vld [vmem:[%s3063_s21 + $0x20] sm:$0x1]  ;;  %s2926_s11 = smov 16  }
  0x3a   : > { %v678_v28 = vor.u32 %v677_v20, %v674_v19  ;;  %v729_v30 = vshll.u32 %v3089_v3, 16  ;;  %v712_v33 = vor.u32 %v711_v23, %v707_v22  ;;  %v733_v35 = vshrl.u32 %v3089_v3, 16  ;;  %v3163_v61 = vld [vmem:[%s3063_s21 + $0x2c] sm:$0x1]  ;;  %v3187_v19 = vld [vmem:[%s3063_s21 + $0x30] sm:$0xf] }
  0x3b   : > { %605 = vrot.lane.b32.xlu1 %v3089_v3, %s2924_s27  ;;  %603 = vrot.lane.b32.xlu0 %v3079_v1, %s2924_s27  ;;  %v689_v32 = vrot.slane %v688_v18, 4  ;;  %v701_v34 = vrot.slane %v699_v25, 5  ;;  %v720_v38 = vshrl.u32 %v3079_v1, 16  ;;  %v717_v39 = vrot.slane %v715_v24, 5  ;;  %v3184_v18 = vld [vmem:[%s3063_s21 + $0x34] sm:$0xf] }
  0x3c   : > { %v679_v37 = vrot.slane %v678_v28, 4  ;;  %v713_v41 = vrot.slane %v712_v33, 4  ;;  %v731_v43 = vrot.slane %v729_v30, 5  ;;  %v735_v44 = vrot.slane %v733_v35, 4  ;;  %v3190_v20 = vld [vmem:[%s3063_s21 + $0x40] sm:$0xf] }
  0x3d   : > { %v702_v40 = vor.u32 %v701_v34, %v698_v29  ;;  %v723_v45 = vshll.u32 %v3079_v1, 16  ;;  %v694_v46 = vsel %vm3134_vm4, %v689_v32, %v693_v27  ;;  %v722_v49 = vrot.slane %v720_v38, 4  ;;  %v3193_v21 = vld [vmem:[%s3063_s21 + $0x3c] sm:$0xf]  ;;  %v3199_v27 = vld [vmem:[%s3063_s21 + $0x48] sm:$0xf] }
  0x3e   : > { %v684_v47 = vsel %vm3134_vm4, %v679_v37, %v683_v11  ;;  %v739_v51 = vshll.u32 %v3144_v42, 16  ;;  %v718_v52 = vsel %vm3134_vm4, %v713_v41, %v717_v39  ;;  %v736_v53 = vor.u32 %v735_v44, %v731_v43  ;;  %v3202_v28 = vld [vmem:[%s3063_s21 + $0x58] sm:$0xf]  ;;  %v3205_v29 = vld [vmem:[%s3063_s21 + $0x54] sm:$0xf]  ;;  %s2927_s12 = smov 28  }
  0x3f   : > { %609 = vrot.lane.b32.xlu1 %v3125_v26, %s2924_s27  ;;  %607 = vrot.lane.b32.xlu0 %v3129_v31, %s2924_s27  ;;  %v703_v48 = vrot.slane %v702_v40, 4  ;;  %v725_v50 = vrot.slane %v723_v45, 5  ;;  %v753_v54 = vshll.u32 %v3125_v26, 16  ;;  %v757_v55 = vshrl.u32 %v3125_v26, 16  ;;  %s2928_s15 = smov 8   ;;  %s2929_s24 = smov 20  }
  0x40   : > { %v744_v58 = vshrl.u32 %v3129_v31, 16  ;;  %v747_v59 = vshll.u32 %v3129_v31, 16  ;;  %v741_v60 = vrot.slane %v739_v51, 5  ;;  %v737_v62 = vrot.slane %v736_v53, 4  ;;  %v2717_v51 = vld [vmem:[%s4191_s3] sm:$0xff]   ;;  %s2930_s23 = smov 32  }
  0x41   : > { %v708_v56 = vsel %vm3134_vm4, %v703_v48, %v707_v22  ;;  %v726_v57 = vor.u32 %v725_v50, %v722_v49  ;;  %v755_v63 = vrot.slane %v753_v54, 5  ;;  %v759_v7 = vrot.slane %v757_v55, 4  ;;  %v3196_v22 = vld [vmem:[%s3063_s21 + $0x4c] sm:$0xf]  ;;  %p2481_p4 = scmp.ne.s32.totalorder %s2904_s30, 1 }
  0x42   : > { %v746_v8 = vrot.slane %v744_v58, 4  ;;  %v749_v9 = vrot.slane %v747_v59, 5  ;;  %v763_v11 = vshll.u32 %v3163_v61, 16  ;;  %v3172_v12 = vsel %vm3134_vm4, %v737_v62, %v741_v60  ;;  %v2714_v48 = vld [vmem:[%s4191_s3 + $0x10] ss:$0 sps:$4 sm:$0x33]  }
  0x43   : > { %865 = vrot.lane.b32.xlu1 %v694_v46, %s2925_s29  ;;  %863 = vrot.lane.b32.xlu0 %v684_v47, %s2925_s29  ;;  %v727_v0 = vrot.slane %v726_v57, 4  ;;  %v760_v14 = vor.u32 %v759_v7, %v755_v63  ;;  %v1121_v17 = vrot.slane %v3095_v5, 5  ;;  %vm503_vm5 = vcmask 27648   ;;  %v487_v59 = vld [vmem:[%s3063_s21 + $0x38] sm:$0x1]  ;;  %s2936_s30 = smov (!%p2481_p4), 32  }
  0x44   : > { %v750_v16 = vor.u32 %v749_v9, %v746_v8  ;;  %v765_v24 = vrot.slane %v763_v11, 5  ;;  %vm1116_vm6 = vcmask 1042432   ;;  %vm1117_vm7 = vcmask 1046532   ;;  %506 = vst.msk [vmem:[#allocation4 + $0x8] sm:$0xf] %vm503_vm5, %v3082_v2  ;;  %s2938_s18 = smov (!%p2481_p4), 64  }
  0x45   : > { %v3176_v13 = vsel %vm3134_vm4, %v727_v0, %v731_v43  ;;  %v761_v23 = vrot.slane %v760_v14, 4  ;;  %504 = vst.msk [vmem:[#allocation4] sm:$0xf] %vm503_vm5, %v3104_v10  ;;  %505 = vst.msk [vmem:[#allocation4 + $0x4] sm:$0xf] %vm503_vm5, %v3095_v5  ;;  %v1123_v5 = vrot.slane %v1121_v17, 4 }
  0x46   : > { %v751_v25 = vrot.slane %v750_v16, 4  ;;  %507 = vst.msk [vmem:[#allocation4 + $0xc] sm:$0xf] %vm503_vm5, %v3092_v4  ;;  %508 = vst.msk [vmem:[#allocation4 + $0x10] sm:$0xf] %vm503_vm5, %v3079_v1  ;;  %v1124_v30 = vrot.slane %v3098_v6, 5 }
  0x47   : > { %869 = vrot.lane.b32.xlu1 %v718_v52, %s2925_s29  ;;  %867 = vrot.lane.b32.xlu0 %v708_v56, %s2925_s29  ;;  %509 = vst.msk [vmem:[#allocation4 + $0x14] sm:$0xf] %vm503_vm5, %v3089_v3  ;;  %510 = vst.msk [vmem:[#allocation4 + $0x18] sm:$0xf] %vm503_vm5, %v3129_v31  ;;  %v2440_v32 = vrot.slane %v3104_v10, 9  ;;  %v1128_v33 = vrot.slane %v3092_v4, 5  ;;  %v3248_v34 = vsel %vm3134_vm4, %v761_v23, %v765_v24 }
  0x48   : > { %511 = vst.msk [vmem:[#allocation4 + $0x1c] sm:$0xf] %vm503_vm5, %v3125_v26  ;;  %512 = vst.msk [vmem:[#allocation4 + $0x20] sm:$0xf] %vm503_vm5, %v3187_v19  ;;  %v3252_v35 = vsel %vm3134_vm4, %v751_v25, %v755_v63  ;;  %v1149_v37 = vrot.slane %v3184_v18, 5  ;;  %v2444_v38 = vrot.slane %v3187_v19, 9 }
  0x49   : > { %513 = vst.msk [vmem:[#allocation4 + $0x24] sm:$0xf] %vm503_vm5, %v3184_v18  ;;  %514 = vst.msk [vmem:[#allocation4 + $0x28] sm:$0xf] %vm503_vm5, %v3193_v21  ;;  %v1131_v10 = vrot.slane %v3113_v15, 5  ;;  %v1130_v41 = vrot.slane %v1128_v33, 4 }
  0x4a   : > { %515 = vst.msk [vmem:[#allocation4 + $0x2c] sm:$0xf] %vm503_vm5, %v3190_v20  ;;  %517 = vst.msk [vmem:[#allocation4 + $0x34] sm:$0xf] %vm503_vm5, %v3196_v22  ;;  %v2441_v43 = vrot.slane %v3082_v2, 9  ;;  %v1135_v45 = vrot.slane %v3089_v3, 5 }
  0x4b   : > { %954 = vrot.lane.b32.xlu1 %v718_v52, %s2926_s11  ;;  %952 = vrot.lane.b32.xlu0 %v708_v56, %s2926_s11  ;;  %516 = vst.msk [vmem:[#allocation4 + $0x30] sm:$0xf] %vm503_vm5, %v3199_v27  ;;  %519 = vst.msk [vmem:[#allocation4 + $0x3c] sm:$0xf] %vm503_vm5, %v3202_v28  ;;  %v1138_v2 = vrot.slane %v3144_v42, 5  ;;  %v2442_v47 = vrot.slane %v3079_v1, 9 }
  0x4c   : > { %518 = vst.msk [vmem:[#allocation4 + $0x38] sm:$0xf] %vm503_vm5, %v3205_v29  ;;  %vm3258_vm8 = vmor %vm1116_vm6, %vm1117_vm7  ;;  %v1137_v46 = vrot.slane %v1135_v45, 4  ;;  %vm1494_vm9 = vcmask 1041408   ;;  %v2715_v1 = vld [vmem:[%s4191_s3 + $0x8] sm:$0xff]   ;;  %v1142_v50 = vrot.slane %v3125_v26, 5 }
  0x4d   : > { %v3266_v4 = vsel %vm3258_vm8, %v2444_v38, %v1149_v37  ;;  %v1125_v39 = vsel %vm3258_vm8, %v1123_v5, %v1124_v30  ;;  %v1122_v40 = vsel %vm3258_vm8, %v2440_v32, %v1121_v17  ;;  %v1132_v44 = vsel %vm3258_vm8, %v1130_v41, %v1131_v10  ;;  %2621 = vmatprep.subr.msk.bf16.mxu0 %vm1494_vm9, %v2714_v48  ;;  %v490_v24 = vld [vmem:[%s3063_s21 + $0x44] sm:$0x1] }
  0x4e   : > { %v1129_v15 = vsel %vm3258_vm8, %v2441_v43, %v1128_v33  ;;  %v1496_v3 = vsel %vm1494_vm9, %v2714_v48, 0  ;;  %v3296_v49 = vsel %vm3258_vm8, %v1137_v46, %v1138_v2  ;;  %v3300_v42 = vsel %vm3258_vm8, %v2442_v47, %v1135_v45 }
  0x4f   : > { %958 = vrot.lane.b32.xlu1 %v3172_v12, %s2926_s11  ;;  %956 = vrot.lane.b32.xlu0 %v3176_v13, %s2926_s11  ;;  %v1144_v52 = vrot.slane %v1142_v50, 4  ;;  %v1145_v53 = vrot.slane %v3163_v61, 5  ;;  %v2443_v54 = vrot.slane %v3129_v31, 9  ;;  %v768_v57 = vshrl.u32 %v3187_v19, 16 }
  0x50   : > { %2540 = vmatpush3.bf16.msra.mxu0 %v1496_v3  ;;  %v771_v58 = vshll.u32 %v3187_v19, 16  ;;  %v787_v0 = vshll.u32 %v487_v59, 16  ;;  %v801_v7 = vshll.u32 %v3190_v20, 16  ;;  %v805_v8 = vshrl.u32 %v3190_v20, 16 }
  0x51   : > { %2541 = vmatprep.subr.bf16.mxu0 %v2715_v1  ;;  %v1146_v55 = vsel %vm3258_vm8, %v1144_v52, %v1145_v53  ;;  %v1143_v56 = vsel %vm3258_vm8, %v2443_v54, %v1142_v50  ;;  %v770_v62 = vrot.slane %v768_v57, 4  ;;  %v792_v14 = vshrl.u32 %v3193_v21, 16 }
  0x52   : > { %v773_v63 = vrot.slane %v771_v58, 5  ;;  %v795_v16 = vshll.u32 %v3193_v21, 16  ;;  %v803_v17 = vrot.slane %v801_v7, 5  ;;  %v811_v30 = vshll.u32 %v490_v24, 16 }
  0x53   : > { %1043 = vrot.lane.b32.xlu1 %v3172_v12, %s2927_s12  ;;  %1041 = vrot.lane.b32.xlu0 %v3176_v13, %s2927_s12  ;;  %v794_v25 = vrot.slane %v792_v14, 4  ;;  %v1151_v43 = vrot.slane %v1149_v37, 4  ;;  %vm584_vm10 = vcmask 126048   ;;  %vm651_vm11 = vcmask 224448  }
  0x54   : > { %2542 = vmatpush3.bf16.msra.mxu0 %v2715_v1  ;;  %v774_v11 = vor.u32 %v773_v63, %v770_v62  ;;  %v797_v5 = vrot.slane %v795_v16, 5  ;;  %v1159_v48 = vrot.slane %v490_v24, 5  ;;  %v2445_v3 = vrot.slane %v3193_v21, 9 }
  0x55   : > { %2543 = vmatprep.subr.bf16.mxu0 %v2717_v51  ;;  %vm911_vm12 = vcmask 60448   ;;  %vm1000_vm13 = vcmask 158848   ;;  %vm1089_vm14 = vcmask 257248   ;;  %vm1223_vm15 = vcmask 93248  }
  0x56   : > { %v775_v23 = vrot.slane %v774_v11, 4  ;;  %v798_v10 = vor.u32 %v797_v5, %v794_v25  ;;  %v853_v11 = vshrl.u32 %v3202_v28, 16  ;;  %vm1296_vm0 = vcmask 191648  }
  0x57   : > { %1047 = vrot.lane.b32.xlu1 %v3248_v34, %s2927_s12  ;;  %1045 = vrot.lane.b32.xlu0 %v3252_v35, %s2927_s12  ;;  %vm1369_vm1 = vcmask 290048   ;;  %vm1469_vm2 = vcmask 293888   ;;  %vm1627_vm3 = vcmask 261120   ;;  %vm2933_vm5 = vmmov 0  }
  0x58   : > { %2544 = vmatpush3.bf16.msra.mxu0 %v2717_v51  ;;  %v855_v25 = vrot.slane %v853_v11, 4 }
  0x5b   : > { %1177 = vrot.lane.b32.xlu1 %v1125_v39, %s2928_s15  ;;  %1175 = vrot.lane.b32.xlu0 %v1122_v40, %s2928_s15  ;;  %v813_v39 = vrot.slane %v811_v30, 5 }
  0x5f   : > { %1181 = vrot.lane.b32.xlu1 %v1132_v44, %s2928_s15  ;;  %1179 = vrot.lane.b32.xlu0 %v1129_v15, %s2928_s15 }
  0x63   : > { %1250 = vrot.lane.b32.xlu1 %v1132_v44, %s2929_s24  ;;  %1248 = vrot.lane.b32.xlu0 %v1129_v15, %s2929_s24  ;;  %v1152_v44 = vrot.slane %v487_v59, 5  ;;  %v3462_v59 = vld [vmem:[%s3063_s21 + $0x50] sm:$0x1] }
  0x65   : > { %v3403_v15 = vsel %vm3258_vm8, %v1151_v43, %v1152_v44 }
  0x67   : > { %1254 = vrot.lane.b32.xlu1 %v3296_v49, %s2929_s24  ;;  %1252 = vrot.lane.b32.xlu0 %v3300_v42, %s2929_s24 }
  0x6b   : > { %1323 = vrot.lane.b32.xlu1 %v3296_v49, %s2930_s23  ;;  %1321 = vrot.lane.b32.xlu0 %v3300_v42, %s2930_s23 }
  0x6f   : > { %546 = vrot.lane.b32.xlu1 %v3125_v26, %s2923_s8  ;;  %544 = vrot.lane.b32.xlu0 %v3129_v31, %s2923_s8  ;;  %v777_v26 = vshll.u32 %v3184_v18, 16  ;;  %v781_v31 = vshrl.u32 %v3184_v18, 16 }
  0x71   : > { %v779_v60 = vrot.slane %v777_v26, 5  ;;  %v783_v61 = vrot.slane %v781_v31, 4  ;;  %v816_v26 = vshrl.u32 %v3199_v27, 16  ;;  %v819_v31 = vshll.u32 %v3199_v27, 16 }
  0x73   : > { %1327 = vrot.lane.b32.xlu1 %v1146_v55, %s2930_s23  ;;  %1325 = vrot.lane.b32.xlu0 %v1143_v56, %s2930_s23  ;;  %v784_v9 = vor.u32 %v783_v61, %v779_v60  ;;  %v3369_v33 = vsel %vm3134_vm4, %v775_v23, %v779_v60  ;;  %v818_v62 = vrot.slane %v816_v26, 4  ;;  %v821_v63 = vrot.slane %v819_v31, 5 }
  0x75   : > { %v822_v16 = vor.u32 %v821_v63, %v818_v62 }
  0x77   : > { %550 = vrot.lane.b32.xlu1 %v3184_v18, %s2923_s8  ;;  %548 = vrot.lane.b32.xlu0 %v3187_v19, %s2923_s8  ;;  %v823_v30 = vrot.slane %v822_v16, 4 }
  0x7b   : > { %613 = vrot.lane.b32.xlu1 %v3184_v18, %s2924_s27  ;;  %611 = vrot.lane.b32.xlu0 %v3187_v19, %s2924_s27  ;;  %v785_v19 = vrot.slane %v784_v9, 4  ;;  %v1156_v18 = vrot.slane %v3190_v20, 5  ;;  %v849_v9 = vshll.u32 %v3202_v28, 16 }
  0x7d   : > { %v1158_v47 = vrot.slane %v1156_v18, 4  ;;  %v3431_v50 = vsel %vm3258_vm8, %v2445_v3, %v1156_v18  ;;  %v851_v24 = vrot.slane %v849_v9, 5 }
  0x7f   : > { %617 = vrot.lane.b32.xlu1 %v3190_v20, %s2924_s27  ;;  %615 = vrot.lane.b32.xlu0 %v3193_v21, %s2924_s27  ;;  %v3427_v1 = vsel %vm3258_vm8, %v1158_v47, %v1159_v48  ;;  %v856_v44 = vor.u32 %v855_v25, %v851_v24 }
  0x83   : > { %873 = vrot.lane.b32.xlu1 %v3172_v12, %s2925_s29  ;;  %871 = vrot.lane.b32.xlu0 %v3176_v13, %s2925_s29  ;;  %v789_v12 = vrot.slane %v787_v0, 5  ;;  %v807_v13 = vrot.slane %v805_v8, 4  ;;  %v835_v8 = vshll.u32 %v3462_v59, 16 }
  0x85   : > { %v3365_v32 = vsel %vm3134_vm4, %v785_v19, %v789_v12  ;;  %v808_v38 = vor.u32 %v807_v13, %v803_v17  ;;  %v840_v12 = vshrl.u32 %v3205_v29, 16  ;;  %v837_v23 = vrot.slane %v835_v8, 5 }
  0x87   : > { %877 = vrot.lane.b32.xlu1 %v3248_v34, %s2925_s29  ;;  %875 = vrot.lane.b32.xlu0 %v3252_v35, %s2925_s29 }
  0x8b   : > { %962 = vrot.lane.b32.xlu1 %v3248_v34, %s2926_s11  ;;  %960 = vrot.lane.b32.xlu0 %v3252_v35, %s2926_s11  ;;  %v809_v34 = vrot.slane %v808_v38, 4  ;;  %v799_v35 = vrot.slane %v798_v10, 4 }
  0x8d   : > { %v3381_v40 = vsel %vm3134_vm4, %v809_v34, %v813_v39  ;;  %v3385_v41 = vsel %vm3134_vm4, %v799_v35, %v803_v17  ;;  %v843_v17 = vshll.u32 %v3205_v29, 16 }
  0x8f   : > { %966 = vrot.lane.b32.xlu1 %v3365_v32, %s2926_s11  ;;  %964 = vrot.lane.b32.xlu0 %v3369_v33, %s2926_s11  ;;  %v845_v38 = vrot.slane %v843_v17, 5 }
  0x93   : > { %1051 = vrot.lane.b32.xlu1 %v3365_v32, %s2927_s12  ;;  %1049 = vrot.lane.b32.xlu0 %v3369_v33, %s2927_s12 }
  0x97   : > { %1055 = vrot.lane.b32.xlu1 %v3381_v40, %s2927_s12  ;;  %1053 = vrot.lane.b32.xlu0 %v3385_v41, %s2927_s12 }
  0x9b   : > { %1185 = vrot.lane.b32.xlu1 %v3296_v49, %s2928_s15  ;;  %1183 = vrot.lane.b32.xlu0 %v3300_v42, %s2928_s15 }
  0x9f   : > { %1189 = vrot.lane.b32.xlu1 %v1146_v55, %s2928_s15  ;;  %1187 = vrot.lane.b32.xlu0 %v1143_v56, %s2928_s15 }
  0xa3   : > { %1258 = vrot.lane.b32.xlu1 %v1146_v55, %s2929_s24  ;;  %1256 = vrot.lane.b32.xlu0 %v1143_v56, %s2929_s24  ;;  %v825_v55 = vshll.u32 %v3196_v22, 16  ;;  %v829_v56 = vshrl.u32 %v3196_v22, 16 }
  0xa5   : > { %v541_v45 = vpop.permute.xlu1 %540  ;;  %v537_v46 = vpop.permute.xlu0 %536  ;;  %v827_v60 = vrot.slane %v825_v55, 5  ;;  %v831_v61 = vrot.slane %v829_v56, 4 }
  0xa6   : > { %587 = vst.msk [vmem:[#allocation4 + $0x8] sm:$0xf] %vm584_vm10, %v541_v45  ;;  %585 = vst.msk [vmem:[#allocation4] sm:$0xf] %vm584_vm10, %v537_v46 }
  0xa7   : > { %1262 = vrot.lane.b32.xlu1 %v3403_v15, %s2929_s24  ;;  %1260 = vrot.lane.b32.xlu0 %v3266_v4, %s2929_s24  ;;  %v832_v14 = vor.u32 %v831_v61, %v827_v60  ;;  %v3497_v43 = vsel %vm3134_vm4, %v823_v30, %v827_v60  ;;  %v2447_v61 = vrot.slane %v3205_v29, 9 }
  0xa9   : > { %v543_v37 = vpop.permute.xlu1 %542  ;;  %v539_v2 = vpop.permute.xlu0 %538  ;;  %v833_v5 = vrot.slane %v832_v14, 4 }
  0xaa   : > { %588 = vst.msk [vmem:[#allocation4 + $0xc] sm:$0xf] %vm584_vm10, %v543_v37  ;;  %586 = vst.msk [vmem:[#allocation4 + $0x4] sm:$0xf] %vm584_vm10, %v539_v2 }
  0xab   : > { %1331 = vrot.lane.b32.xlu1 %v3403_v15, %s2930_s23  ;;  %1329 = vrot.lane.b32.xlu0 %v3266_v4, %s2930_s23  ;;  %v3493_v35 = vsel %vm3134_vm4, %v833_v5, %v837_v23  ;;  %v3612_v23 = vld [vmem:[%s3073_s17 + $0x4] sm:$0xf] }
  0xad   : > { %v606_v49 = vpop.permute.xlu1 %605  ;;  %v604_v42 = vpop.permute.xlu0 %603 }
  0xae   : > { %653 = vst.msk [vmem:[#allocation4 + $0x4] sm:$0xf] %vm651_vm11, %v606_v49  ;;  %652 = vst.msk [vmem:[#allocation4] sm:$0xf] %vm651_vm11, %v604_v42 }
  0xaf   : > { %554 = vrot.lane.b32.xlu1 %v3190_v20, %s2923_s8  ;;  %552 = vrot.lane.b32.xlu0 %v3193_v21, %s2923_s8 }
  0xb1   : > { %v610_v51 = vpop.permute.xlu1 %609  ;;  %v608_v52 = vpop.permute.xlu0 %607 }
  0xb2   : > { %655 = vst.msk [vmem:[#allocation4 + $0xc] sm:$0xf] %vm651_vm11, %v610_v51  ;;  %654 = vst.msk [vmem:[#allocation4 + $0x8] sm:$0xf] %vm651_vm11, %v608_v52 }
  0xb3   : > { %1335 = vrot.lane.b32.xlu1 %v3427_v1, %s2930_s23  ;;  %1333 = vrot.lane.b32.xlu0 %v3431_v50, %s2930_s23 }
  0xb5   : > { %v866_v20 = vpop.permute.xlu1 %865  ;;  %v864_v21 = vpop.permute.xlu0 %863 }
  0xb6   : > { %913 = vst.msk [vmem:[#allocation4 + $0x4] sm:$0xf] %vm911_vm12, %v866_v20  ;;  %912 = vst.msk [vmem:[#allocation4] sm:$0xf] %vm911_vm12, %v864_v21  ;;  %v1163_v20 = vrot.slane %v3196_v22, 5 }
  0xb7   : > { %558 = vrot.lane.b32.xlu1 %v3196_v22, %s2923_s8  ;;  %556 = vrot.lane.b32.xlu0 %v3199_v27, %s2923_s8 }
  0xb9   : > { %v870_v53 = vpop.permute.xlu1 %869  ;;  %v868_v54 = vpop.permute.xlu0 %867 }
  0xba   : > { %915 = vst.msk [vmem:[#allocation4 + $0xc] sm:$0xf] %vm911_vm12, %v870_v53  ;;  %914 = vst.msk [vmem:[#allocation4 + $0x8] sm:$0xf] %vm911_vm12, %v868_v54  ;;  %v1165_v54 = vrot.slane %v1163_v20, 4 }
  0xbb   : > { %621 = vrot.lane.b32.xlu1 %v3196_v22, %s2924_s27  ;;  %619 = vrot.lane.b32.xlu0 %v3199_v27, %s2924_s27 }
  0xbd   : > { %v955_v57 = vpop.permute.xlu1 %954  ;;  %v953_v58 = vpop.permute.xlu0 %952 }
  0xbe   : > { %1002 = vst.msk [vmem:[#allocation4 + $0x4] sm:$0xf] %vm1000_vm13, %v955_v57  ;;  %1001 = vst.msk [vmem:[#allocation4] sm:$0xf] %vm1000_vm13, %v953_v58 }
  0xbf   : > { %625 = vrot.lane.b32.xlu1 %v3202_v28, %s2924_s27  ;;  %623 = vrot.lane.b32.xlu0 %v3205_v29, %s2924_s27 }
  0xc1   : > { %v959_v0 = vpop.permute.xlu1 %958  ;;  %v957_v7 = vpop.permute.xlu0 %956 }
  0xc2   : > { %1004 = vst.msk [vmem:[#allocation4 + $0xc] sm:$0xf] %vm1000_vm13, %v959_v0  ;;  %1003 = vst.msk [vmem:[#allocation4 + $0x8] sm:$0xf] %vm1000_vm13, %v957_v7 }
  0xc3   : > { %881 = vrot.lane.b32.xlu1 %v3365_v32, %s2925_s29  ;;  %879 = vrot.lane.b32.xlu0 %v3369_v33, %s2925_s29  ;;  %v3482_v32 = vld [vmem:[%s3063_s21 + $0x5c] sm:$0x1]  ;;  %v842_v33 = vrot.slane %v840_v12, 4 }
  0xc4   : > { %v859_v39 = vshll.u32 %v3482_v32, 16  ;;  %v1173_v60 = vrot.slane %v3482_v32, 5 }
  0xc5   : > { %v1044_v13 = vpop.permute.xlu1 %1043  ;;  %v1042_v19 = vpop.permute.xlu0 %1041  ;;  %v846_v45 = vor.u32 %v845_v38, %v842_v33 }
  0xc6   : > { %1091 = vst.msk [vmem:[#allocation4 + $0x4] sm:$0xf] %vm1089_vm14, %v1044_v13  ;;  %1090 = vst.msk [vmem:[#allocation4] sm:$0xf] %vm1089_vm14, %v1042_v19 }
  0xc7   : > { %885 = vrot.lane.b32.xlu1 %v3381_v40, %s2925_s29  ;;  %883 = vrot.lane.b32.xlu0 %v3385_v41, %s2925_s29  ;;  %v847_v37 = vrot.slane %v846_v45, 4 }
  0xc9   : > { %v1048_v10 = vpop.permute.xlu1 %1047  ;;  %v1046_v34 = vpop.permute.xlu0 %1045  ;;  %v3517_v3 = vsel %vm3134_vm4, %v847_v37, %v851_v24  ;;  %v3615_v24 = vld [vmem:[%s3073_s17] sm:$0xf] }
  0xca   : > { %1093 = vst.msk [vmem:[#allocation4 + $0xc] sm:$0xf] %vm1089_vm14, %v1048_v10  ;;  %1092 = vst.msk [vmem:[#allocation4 + $0x8] sm:$0xf] %vm1089_vm14, %v1046_v34  ;;  %v3626_v10 = vld [vmem:[%s3068_s26 + $0x8] sm:$0x1] }
  0xcb   : > { %970 = vrot.lane.b32.xlu1 %v3381_v40, %s2926_s11  ;;  %968 = vrot.lane.b32.xlu0 %v3385_v41, %s2926_s11  ;;  %v857_v40 = vrot.slane %v856_v44, 4  ;;  %v861_v41 = vrot.slane %v859_v39, 5  ;;  %v1018_v37 = vshrl.u32 %v3615_v24, 16 }
  0xcd   : > { %v1178_v46 = vpop.permute.xlu1 %1177  ;;  %v1176_v18 = vpop.permute.xlu0 %1175  ;;  %v3513_v48 = vsel %vm3134_vm4, %v857_v40, %v861_v41  ;;  %v948_v40 = vshll.u32 %v3626_v10, 16  ;;  %v1031_v41 = vshrl.u32 %v3612_v23, 16 }
  0xce   : > { %1225 = vst.msk [vmem:[#allocation4 + $0x4] sm:$0xf] %vm1223_vm15, %v1178_v46  ;;  %1224 = vst.msk [vmem:[#allocation4] sm:$0xf] %vm1223_vm15, %v1176_v18  ;;  %v1027_v46 = vshll.u32 %v3612_v23, 16 }
  0xcf   : > { %974 = vrot.lane.b32.xlu1 %v3493_v35, %s2926_s11  ;;  %972 = vrot.lane.b32.xlu0 %v3497_v43, %s2926_s11 }
  0xd1   : > { %v1182_v2 = vpop.permute.xlu1 %1181  ;;  %v1180_v47 = vpop.permute.xlu0 %1179 }
  0xd2   : > { %1227 = vst.msk [vmem:[#allocation4 + $0xc] sm:$0xf] %vm1223_vm15, %v1182_v2  ;;  %1226 = vst.msk [vmem:[#allocation4 + $0x8] sm:$0xf] %vm1223_vm15, %v1180_v47  ;;  %v1021_v2 = vshll.u32 %v3615_v24, 16 }
  0xd3   : > { %1059 = vrot.lane.b32.xlu1 %v3493_v35, %s2927_s12  ;;  %1057 = vrot.lane.b32.xlu0 %v3497_v43, %s2927_s12 }
  0xd5   : > { %v1251_v49 = vpop.permute.xlu1 %1250  ;;  %v1249_v42 = vpop.permute.xlu0 %1248 }
  0xd6   : > { %1298 = vst.msk [vmem:[#allocation4 + $0x4] sm:$0xf] %vm1296_vm0, %v1251_v49  ;;  %1297 = vst.msk [vmem:[#allocation4] sm:$0xf] %vm1296_vm0, %v1249_v42 }
  0xd7   : > { %1063 = vrot.lane.b32.xlu1 %v3513_v48, %s2927_s12  ;;  %1061 = vrot.lane.b32.xlu0 %v3517_v3, %s2927_s12 }
  0xd9   : > { %v1255_v51 = vpop.permute.xlu1 %1254  ;;  %v1253_v52 = vpop.permute.xlu0 %1252 }
  0xda   : > { %1300 = vst.msk [vmem:[#allocation4 + $0xc] sm:$0xf] %vm1296_vm0, %v1255_v51  ;;  %1299 = vst.msk [vmem:[#allocation4 + $0x8] sm:$0xf] %vm1296_vm0, %v1253_v52  ;;  %v950_v51 = vrot.slane %v948_v40, 5  ;;  %v1033_v52 = vrot.slane %v1031_v41, 4 }
  0xdb   : > { %1193 = vrot.lane.b32.xlu1 %v3403_v15, %s2928_s15  ;;  %1191 = vrot.lane.b32.xlu0 %v3266_v4, %s2928_s15  ;;  %v1166_v15 = vrot.slane %v3462_v59, 5  ;;  %v2446_v4 = vrot.slane %v3199_v27, 9 }
  0xdd   : > { %v1324_v21 = vpop.permute.xlu1 %1323  ;;  %v1322_v53 = vpop.permute.xlu0 %1321  ;;  %v3548_v22 = vsel %vm3258_vm8, %v1165_v54, %v1166_v15  ;;  %v3552_v26 = vsel %vm3258_vm8, %v2446_v4, %v1163_v20  ;;  %v1020_v20 = vrot.slane %v1018_v37, 4  ;;  %v3646_v4 = vld [vmem:[%s3073_s17 + $0x8] sm:$0x1] }
  0xde   : > { %1371 = vst.msk [vmem:[#allocation4 + $0x4] sm:$0xf] %vm1369_vm1, %v1324_v21  ;;  %1370 = vst.msk [vmem:[#allocation4] sm:$0xf] %vm1369_vm1, %v1322_v53  ;;  %v1023_v21 = vrot.slane %v1021_v2, 5 }
  0xdf   : > { %1197 = vrot.lane.b32.xlu1 %v3427_v1, %s2928_s15  ;;  %1195 = vrot.lane.b32.xlu0 %v3431_v50, %s2928_s15 }
  0xe1   : > { %v547_v55 = vpop.permute.xlu1 %546  ;;  %v545_v56 = vpop.permute.xlu0 %544 }
  0xe2   : > { %590 = vst.msk [vmem:[#allocation4 + $0x14] sm:$0xf] %vm584_vm10, %v547_v55  ;;  %589 = vst.msk [vmem:[#allocation4 + $0x10] sm:$0xf] %vm584_vm10, %v545_v56 }
  0xe3   : > { %1266 = vrot.lane.b32.xlu1 %v3427_v1, %s2929_s24  ;;  %1264 = vrot.lane.b32.xlu0 %v3431_v50, %s2929_s24  ;;  %v1170_v1 = vrot.slane %v3202_v28, 5 }
  0xe5   : > { %v1328_v27 = vpop.permute.xlu1 %1327  ;;  %v1326_v31 = vpop.permute.xlu0 %1325  ;;  %v2716_v57 = vld [vmem:[#allocation4] sm:$0xff]   ;;  %v1172_v59 = vrot.slane %v1170_v1, 4  ;;  %v3583_v8 = vsel %vm3258_vm8, %v2447_v61, %v1170_v1 }
  0xe6   : > { %1373 = vst.msk [vmem:[#allocation4 + $0xc] sm:$0xf] %vm1369_vm1, %v1328_v27  ;;  %1372 = vst.msk [vmem:[#allocation4 + $0x8] sm:$0xf] %vm1369_vm1, %v1326_v31  ;;  %2545 = vmatprep.mubr.msk.bf16.mxu0 %vm1469_vm2, %v2716_v57  ;;  %v1037_v31 = vshll.u32 %v3646_v4, 16  ;;  %v1024_v57 = vor.u32 %v1023_v21, %v1020_v20 }
  0xe7   : > { %1270 = vrot.lane.b32.xlu1 %v3548_v22, %s2929_s24  ;;  %1268 = vrot.lane.b32.xlu0 %v3552_v26, %s2929_s24  ;;  %v3579_v7 = vsel %vm3258_vm8, %v1172_v59, %v1173_v60 }
  0xe9   : > { %v551_v50 = vpop.permute.xlu1 %550  ;;  %v549_v58 = vpop.permute.xlu0 %548 }
  0xea   : > { %592 = vst.msk [vmem:[#allocation4 + $0x1c] sm:$0xf] %vm584_vm10, %v551_v50  ;;  %591 = vst.msk [vmem:[#allocation4 + $0x18] sm:$0xf] %vm584_vm10, %v549_v58  ;;  %v1025_v58 = vrot.slane %v1024_v57, 4 }
  0xeb   : > { %1339 = vrot.lane.b32.xlu1 %v3548_v22, %s2930_s23  ;;  %1337 = vrot.lane.b32.xlu0 %v3552_v26, %s2930_s23 }
  0xed   : > { %v614_v62 = vpop.permute.xlu1 %613  ;;  %v612_v63 = vpop.permute.xlu0 %611  ;;  %v2718_v0 = vld [vmem:[#allocation4 + $0x8] sm:$0xff]  }
  0xee   : > { %657 = vst.msk [vmem:[#allocation4 + $0x14] sm:$0xf] %vm651_vm11, %v614_v62  ;;  %656 = vst.msk [vmem:[#allocation4 + $0x10] sm:$0xf] %vm651_vm11, %v612_v63  ;;  %2546 = vmatmul.mubr.msk.bf16.vlgmr.msra.gmra.mxu0 %vm1469_vm2, %v2718_v0 }
  0xef   : > { %562 = vrot.lane.b32.xlu1 %v3202_v28, %s2923_s8  ;;  %560 = vrot.lane.b32.xlu0 %v3205_v29, %s2923_s8  ;;  %v3592_v28 = vld [vmem:[%s3068_s26 + $0x4] sm:$0xf]  ;;  %v3595_v29 = vld [vmem:[%s3068_s26] sm:$0xf] }
  0xf0   : > { %v938_v13 = vshll.u32 %v3592_v28, 16  ;;  %v942_v19 = vshrl.u32 %v3592_v28, 16  ;;  %v929_v25 = vshrl.u32 %v3595_v29, 16  ;;  %v932_v5 = vshll.u32 %v3595_v29, 16 }
  0xf1   : > { %v618_v9 = vpop.permute.xlu1 %617  ;;  %v616_v11 = vpop.permute.xlu0 %615  ;;  %v1243_v36 = vrot.slane %v3592_v28, 5 }
  0xf2   : > { %659 = vst.msk [vmem:[#allocation4 + $0x1c] sm:$0xf] %vm651_vm11, %v618_v9  ;;  %658 = vst.msk [vmem:[#allocation4 + $0x18] sm:$0xf] %vm651_vm11, %v616_v11  ;;  %v940_v33 = vrot.slane %v938_v13, 5  ;;  %v944_v38 = vrot.slane %v942_v19, 4 }
  0xf3   : > { %1343 = vrot.lane.b32.xlu1 %v3579_v7, %s2930_s23  ;;  %1341 = vrot.lane.b32.xlu0 %v3583_v8, %s2930_s23  ;;  %v931_v34 = vrot.slane %v929_v25, 4  ;;  %v934_v39 = vrot.slane %v932_v5, 5 }
  0xf4   : > { %v945_v18 = vor.u32 %v944_v38, %v940_v33 }
  0xf5   : > { %v874_v14 = vpop.permute.xlu1 %873  ;;  %v872_v16 = vpop.permute.xlu0 %871  ;;  %v935_v47 = vor.u32 %v934_v39, %v931_v34 }
  0xf6   : > { %917 = vst.msk [vmem:[#allocation4 + $0x14] sm:$0xf] %vm911_vm12, %v874_v14  ;;  %916 = vst.msk [vmem:[#allocation4 + $0x10] sm:$0xf] %vm911_vm12, %v872_v16 }
  0xf7   : > { %566 = vrot.lane.b32.xlu1 %v3592_v28, %s2923_s8  ;;  %564 = vrot.lane.b32.xlu0 %v3595_v29, %s2923_s8  ;;  %v936_v53 = vrot.slane %v935_v47, 4 }
  0xf9   : > { %v878_v12 = vpop.permute.xlu1 %877  ;;  %v876_v17 = vpop.permute.xlu0 %875  ;;  %v941_v56 = vsel %vm3134_vm4, %v936_v53, %v940_v33 }
  0xfa   : > { %919 = vst.msk [vmem:[#allocation4 + $0x1c] sm:$0xf] %vm911_vm12, %v878_v12  ;;  %918 = vst.msk [vmem:[#allocation4 + $0x18] sm:$0xf] %vm911_vm12, %v876_v17  ;;  %v1245_v12 = vrot.slane %v1243_v36, 4  ;;  %v2448_v17 = vrot.slane %v3595_v29, 9 }
  0xfb   : > { %629 = vrot.lane.b32.xlu1 %v3592_v28, %s2924_s27  ;;  %627 = vrot.lane.b32.xlu0 %v3595_v29, %s2924_s27  ;;  %v1316_v28 = vrot.slane %v3612_v23, 5 }
  0xfc   : > { %v1244_v29 = vsel %vm3258_vm8, %v2448_v17, %v1243_v36 }
  0xfd   : > { %v963_v30 = vpop.permute.xlu1 %962  ;;  %v961_v32 = vpop.permute.xlu0 %960 }
  0xfe   : > { %1006 = vst.msk [vmem:[#allocation4 + $0x14] sm:$0xf] %vm1000_vm13, %v963_v30  ;;  %1005 = vst.msk [vmem:[#allocation4 + $0x10] sm:$0xf] %vm1000_vm13, %v961_v32 }
  0xff   : > { %633 = vrot.lane.b32.xlu1 %v3612_v23, %s2924_s27  ;;  %631 = vrot.lane.b32.xlu0 %v3615_v24, %s2924_s27  ;;  %v1319_v23 = vrot.slane %v3646_v4, 5 }
 0x101   : > { %v967_v44 = vpop.permute.xlu1 %966  ;;  %v965_v45 = vpop.permute.xlu0 %964 }
 0x102   : > { %1008 = vst.msk [vmem:[#allocation4 + $0x1c] sm:$0xf] %vm1000_vm13, %v967_v44  ;;  %1007 = vst.msk [vmem:[#allocation4 + $0x18] sm:$0xf] %vm1000_vm13, %v965_v45 }
 0x103   : > { %889 = vrot.lane.b32.xlu1 %v3493_v35, %s2925_s29  ;;  %887 = vrot.lane.b32.xlu0 %v3497_v43, %s2925_s29  ;;  %v1029_v35 = vrot.slane %v1027_v46, 5  ;;  %v946_v43 = vrot.slane %v945_v18, 4 }
 0x105   : > { %v1052_v49 = vpop.permute.xlu1 %1051  ;;  %v1050_v42 = vpop.permute.xlu0 %1049  ;;  %v951_v55 = vsel %vm3134_vm4, %v946_v43, %v950_v51  ;;  %v1034_v27 = vor.u32 %v1033_v52, %v1029_v35  ;;  %v1030_v62 = vsel %vm3134_vm4, %v1025_v58, %v1029_v35 }
 0x106   : > { %1095 = vst.msk [vmem:[#allocation4 + $0x14] sm:$0xf] %vm1089_vm14, %v1052_v49  ;;  %1094 = vst.msk [vmem:[#allocation4 + $0x10] sm:$0xf] %vm1089_vm14, %v1050_v42 }
 0x107   : > { %893 = vrot.lane.b32.xlu1 %v3513_v48, %s2925_s29  ;;  %891 = vrot.lane.b32.xlu0 %v3517_v3, %s2925_s29 }
 0x109   : > { %v1056_v54 = vpop.permute.xlu1 %1055  ;;  %v1054_v15 = vpop.permute.xlu0 %1053 }
 0x10a   : > { %1097 = vst.msk [vmem:[#allocation4 + $0x1c] sm:$0xf] %vm1089_vm14, %v1056_v54  ;;  %1096 = vst.msk [vmem:[#allocation4 + $0x18] sm:$0xf] %vm1089_vm14, %v1054_v15 }
 0x10b   : > { %978 = vrot.lane.b32.xlu1 %v3513_v48, %s2926_s11  ;;  %976 = vrot.lane.b32.xlu0 %v3517_v3, %s2926_s11  ;;  %v1035_v48 = vrot.slane %v1034_v27, 4  ;;  %v1039_v3 = vrot.slane %v1037_v31, 5 }
 0x10d   : > { %v1186_v1 = vpop.permute.xlu1 %1185  ;;  %v1184_v50 = vpop.permute.xlu0 %1183  ;;  %v1040_v61 = vsel %vm3134_vm4, %v1035_v48, %v1039_v3  ;;  %vm1876_vm4 = vcmask 64512  }
 0x10e   : > { %1229 = vst.msk [vmem:[#allocation4 + $0x14] sm:$0xf] %vm1223_vm15, %v1186_v1  ;;  %1228 = vst.msk [vmem:[#allocation4 + $0x10] sm:$0xf] %vm1223_vm15, %v1184_v50 }
 0x10f   : > { %982 = vrot.lane.b32.xlu1 %v951_v55, %s2926_s11  ;;  %980 = vrot.lane.b32.xlu0 %v941_v56, %s2926_s11 }
 0x111   : > { %v1190_v59 = vpop.permute.xlu1 %1189  ;;  %v1188_v60 = vpop.permute.xlu0 %1187 }
 0x112   : > { %1231 = vst.msk [vmem:[#allocation4 + $0x1c] sm:$0xf] %vm1223_vm15, %v1190_v59  ;;  %1230 = vst.msk [vmem:[#allocation4 + $0x18] sm:$0xf] %vm1223_vm15, %v1188_v60 }
 0x113   : > { %1067 = vrot.lane.b32.xlu1 %v951_v55, %s2927_s12  ;;  %1065 = vrot.lane.b32.xlu0 %v941_v56, %s2927_s12 }
 0x115   : > { %v1259_v63 = vpop.permute.xlu1 %1258  ;;  %v1257_v0 = vpop.permute.xlu0 %1256 }
 0x116   : > { %1302 = vst.msk [vmem:[#allocation4 + $0x14] sm:$0xf] %vm1296_vm0, %v1259_v63  ;;  %1301 = vst.msk [vmem:[#allocation4 + $0x10] sm:$0xf] %vm1296_vm0, %v1257_v0 }
 0x117   : > { %1071 = vrot.lane.b32.xlu1 %v1040_v61, %s2927_s12  ;;  %1069 = vrot.lane.b32.xlu0 %v1030_v62, %s2927_s12 }
 0x119   : > { %v1263_v9 = vpop.permute.xlu1 %1262  ;;  %v1261_v11 = vpop.permute.xlu0 %1260 }
 0x11a   : > { %1304 = vst.msk [vmem:[#allocation4 + $0x1c] sm:$0xf] %vm1296_vm0, %v1263_v9  ;;  %1303 = vst.msk [vmem:[#allocation4 + $0x18] sm:$0xf] %vm1296_vm0, %v1261_v11 }
 0x11b   : > { %1201 = vrot.lane.b32.xlu1 %v3548_v22, %s2928_s15  ;;  %1199 = vrot.lane.b32.xlu0 %v3552_v26, %s2928_s15  ;;  %v1246_v22 = vrot.slane %v3626_v10, 5 }
 0x11d   : > { %v1332_v14 = vpop.permute.xlu1 %1331  ;;  %v1330_v16 = vpop.permute.xlu0 %1329  ;;  %v1247_v19 = vsel %vm3258_vm8, %v1245_v12, %v1246_v22 }
 0x11e   : > { %1375 = vst.msk [vmem:[#allocation4 + $0x14] sm:$0xf] %vm1369_vm1, %v1332_v14  ;;  %1374 = vst.msk [vmem:[#allocation4 + $0x10] sm:$0xf] %vm1369_vm1, %v1330_v16 }
 0x11f   : > { %1205 = vrot.lane.b32.xlu1 %v3579_v7, %s2928_s15  ;;  %1203 = vrot.lane.b32.xlu0 %v3583_v8, %s2928_s15  ;;  %s2937_s15 = smov (!%p2481_p4), 96  }
 0x121   : > { %v555_v26 = vpop.permute.xlu1 %554  ;;  %v553_v13 = vpop.permute.xlu0 %552 }
 0x122   : > { %594 = vst.msk [vmem:[#allocation4 + $0x24] sm:$0xf] %vm584_vm10, %v555_v26  ;;  %593 = vst.msk [vmem:[#allocation4 + $0x20] sm:$0xf] %vm584_vm10, %v553_v13 }
 0x123   : > { %1274 = vrot.lane.b32.xlu1 %v3579_v7, %s2929_s24  ;;  %1272 = vrot.lane.b32.xlu0 %v3583_v8, %s2929_s24  ;;  %v2449_v7 = vrot.slane %v3615_v24, 9  ;;  %v1318_v8 = vrot.slane %v1316_v28, 4 }
 0x125   : > { %v1336_v25 = vpop.permute.xlu1 %1335  ;;  %v1334_v5 = vpop.permute.xlu0 %1333  ;;  %v2719_v30 = vld [vmem:[#allocation4 + $0x10] sm:$0xff]   ;;  %v1320_v38 = vsel %vm3258_vm8, %v1318_v8, %v1319_v23  ;;  %v1317_v24 = vsel %vm3258_vm8, %v2449_v7, %v1316_v28 }
 0x126   : > { %1377 = vst.msk [vmem:[#allocation4 + $0x1c] sm:$0xf] %vm1369_vm1, %v1336_v25  ;;  %1376 = vst.msk [vmem:[#allocation4 + $0x18] sm:$0xf] %vm1369_vm1, %v1334_v5  ;;  %2549 = vmatprep.mubr.msk.bf16.mxu0 %vm1469_vm2, %v2719_v30 }
 0x127   : > { %1278 = vrot.lane.b32.xlu1 %v1247_v19, %s2929_s24  ;;  %1276 = vrot.lane.b32.xlu0 %v1244_v29, %s2929_s24 }
 0x129   : > { %v559_v32 = vpop.permute.xlu1 %558  ;;  %v557_v33 = vpop.permute.xlu0 %556 }
 0x12a   : > { %596 = vst.msk [vmem:[#allocation4 + $0x2c] sm:$0xf] %vm584_vm10, %v559_v32  ;;  %595 = vst.msk [vmem:[#allocation4 + $0x28] sm:$0xf] %vm584_vm10, %v557_v33 }
 0x12b   : > { %1347 = vrot.lane.b32.xlu1 %v1247_v19, %s2930_s23  ;;  %1345 = vrot.lane.b32.xlu0 %v1244_v29, %s2930_s23 }
 0x12d   : > { %v622_v10 = vpop.permute.xlu1 %621  ;;  %v620_v34 = vpop.permute.xlu0 %619  ;;  %v2720_v39 = vld [vmem:[#allocation4 + $0x18] sm:$0xff]  }
 0x12e   : > { %661 = vst.msk [vmem:[#allocation4 + $0x24] sm:$0xf] %vm651_vm11, %v622_v10  ;;  %660 = vst.msk [vmem:[#allocation4 + $0x20] sm:$0xf] %vm651_vm11, %v620_v34  ;;  %2550 = vmatmul.mubr.msk.bf16.gmra.mxu0 %vm1469_vm2, %v2720_v39  ;;  %v3786_v34 = vld [vmem:[%s4192_s4] ss:$0 sm:$0xff] }
 0x12f   : > { %1351 = vrot.lane.b32.xlu1 %v1320_v38, %s2930_s23  ;;  %1349 = vrot.lane.b32.xlu0 %v1317_v24, %s2930_s23 }
 0x131   : > { %v626_v44 = vpop.permute.xlu1 %625  ;;  %v624_v45 = vpop.permute.xlu0 %623 }
 0x132   : > { %663 = vst.msk [vmem:[#allocation4 + $0x2c] sm:$0xf] %vm651_vm11, %v626_v44  ;;  %662 = vst.msk [vmem:[#allocation4 + $0x28] sm:$0xf] %vm651_vm11, %v624_v45 }
 0x135   : > { %v882_v6 = vpop.permute.xlu1 %881  ;;  %v880_v46 = vpop.permute.xlu0 %879 }
 0x136   : > { %921 = vst.msk [vmem:[#allocation4 + $0x24] sm:$0xf] %vm911_vm12, %v882_v6  ;;  %920 = vst.msk [vmem:[#allocation4 + $0x20] sm:$0xf] %vm911_vm12, %v880_v46 }
 0x139   : > { %v886_v18 = vpop.permute.xlu1 %885  ;;  %v884_v40 = vpop.permute.xlu0 %883 }
 0x13a   : > { %923 = vst.msk [vmem:[#allocation4 + $0x2c] sm:$0xf] %vm911_vm12, %v886_v18  ;;  %922 = vst.msk [vmem:[#allocation4 + $0x28] sm:$0xf] %vm911_vm12, %v884_v40 }
 0x13d   : > { %v971_v41 = vpop.permute.xlu1 %970  ;;  %v969_v37 = vpop.permute.xlu0 %968 }
 0x13e   : > { %1010 = vst.msk [vmem:[#allocation4 + $0x24] sm:$0xf] %vm1000_vm13, %v971_v41  ;;  %1009 = vst.msk [vmem:[#allocation4 + $0x20] sm:$0xf] %vm1000_vm13, %v969_v37 }
 0x141   : > { %v975_v2 = vpop.permute.xlu1 %974  ;;  %v973_v47 = vpop.permute.xlu0 %972 }
 0x142   : > { %1012 = vst.msk [vmem:[#allocation4 + $0x2c] sm:$0xf] %vm1000_vm13, %v975_v2  ;;  %1011 = vst.msk [vmem:[#allocation4 + $0x28] sm:$0xf] %vm1000_vm13, %v973_v47 }
 0x145   : > { %v1060_v49 = vpop.permute.xlu1 %1059  ;;  %v1058_v42 = vpop.permute.xlu0 %1057 }
 0x146   : > { %1099 = vst.msk [vmem:[#allocation4 + $0x24] sm:$0xf] %vm1089_vm14, %v1060_v49  ;;  %1098 = vst.msk [vmem:[#allocation4 + $0x20] sm:$0xf] %vm1089_vm14, %v1058_v42 }
 0x149   : > { %v1064_v35 = vpop.permute.xlu1 %1063  ;;  %v1062_v43 = vpop.permute.xlu0 %1061 }
 0x14a   : > { %1101 = vst.msk [vmem:[#allocation4 + $0x2c] sm:$0xf] %vm1089_vm14, %v1064_v35  ;;  %1100 = vst.msk [vmem:[#allocation4 + $0x28] sm:$0xf] %vm1089_vm14, %v1062_v43 }
 0x14d   : > { %v1194_v51 = vpop.permute.xlu1 %1193  ;;  %v1192_v52 = vpop.permute.xlu0 %1191 }
 0x14e   : > { %1233 = vst.msk [vmem:[#allocation4 + $0x24] sm:$0xf] %vm1223_vm15, %v1194_v51  ;;  %1232 = vst.msk [vmem:[#allocation4 + $0x20] sm:$0xf] %vm1223_vm15, %v1192_v52 }
 0x151   : > { %v1198_v20 = vpop.permute.xlu1 %1197  ;;  %v1196_v21 = vpop.permute.xlu0 %1195 }
 0x152   : > { %1235 = vst.msk [vmem:[#allocation4 + $0x2c] sm:$0xf] %vm1223_vm15, %v1198_v20  ;;  %1234 = vst.msk [vmem:[#allocation4 + $0x28] sm:$0xf] %vm1223_vm15, %v1196_v21 }
 0x155   : > { %v1267_v53 = vpop.permute.xlu1 %1266  ;;  %v1265_v54 = vpop.permute.xlu0 %1264 }
 0x156   : > { %1306 = vst.msk [vmem:[#allocation4 + $0x24] sm:$0xf] %vm1296_vm0, %v1267_v53  ;;  %1305 = vst.msk [vmem:[#allocation4 + $0x20] sm:$0xf] %vm1296_vm0, %v1265_v54  ;;  %v2725_v54 = vld [vmem:[%s4193_s5 + $0x8] sm:$0xff]  }
 0x157   : > { %2561 = vmatprep.subr.bf16.mxu1 %v2725_v54 }
 0x158   : > { %2562 = vmatpush3.bf16.msra.mxu1 %v2725_v54 }
 0x159   : > { %v1271_v15 = vpop.permute.xlu1 %1270  ;;  %v1269_v4 = vpop.permute.xlu0 %1268 }
 0x15a   : > { %1308 = vst.msk [vmem:[#allocation4 + $0x2c] sm:$0xf] %vm1296_vm0, %v1271_v15  ;;  %1307 = vst.msk [vmem:[#allocation4 + $0x28] sm:$0xf] %vm1296_vm0, %v1269_v4  ;;  %v2726_v15 = vld [vmem:[%s4193_s5] sm:$0xff]  }
 0x15b   : > { %2563 = vmatprep.subr.bf16.mxu1 %v2726_v15 }
 0x15c   : > { %2564 = vmatpush3.bf16.msra.mxu1 %v2726_v15 }
 0x15d   : > { %v1340_v55 = vpop.permute.xlu1 %1339  ;;  %v1338_v56 = vpop.permute.xlu0 %1337 }
 0x15e   : > { %1379 = vst.msk [vmem:[#allocation4 + $0x24] sm:$0xf] %vm1369_vm1, %v1340_v55  ;;  %1378 = vst.msk [vmem:[#allocation4 + $0x20] sm:$0xf] %vm1369_vm1, %v1338_v56 }
 0x161   : > { %v563_v27 = vpop.permute.xlu1 %562  ;;  %v561_v31 = vpop.permute.xlu0 %560 }
 0x162   : > { %598 = vst.msk [vmem:[#allocation4 + $0x34] sm:$0xf] %vm584_vm10, %v563_v27  ;;  %597 = vst.msk [vmem:[#allocation4 + $0x30] sm:$0xf] %vm584_vm10, %v561_v31 }
 0x165   : > { %v1344_v57 = vpop.permute.xlu1 %1343  ;;  %v1342_v1 = vpop.permute.xlu0 %1341  ;;  %v2721_v50 = vld [vmem:[#allocation4 + $0x20] sm:$0xff]  }
 0x166   : > { %1381 = vst.msk [vmem:[#allocation4 + $0x2c] sm:$0xf] %vm1369_vm1, %v1344_v57  ;;  %1380 = vst.msk [vmem:[#allocation4 + $0x28] sm:$0xf] %vm1369_vm1, %v1342_v1  ;;  %2553 = vmatprep.mubr.msk.bf16.mxu0 %vm1469_vm2, %v2721_v50 }
 0x169   : > { %v567_v48 = vpop.permute.xlu1 %566  ;;  %v565_v3 = vpop.permute.xlu0 %564 }
 0x16a   : > { %600 = vst.msk [vmem:[#allocation4 + $0x3c] sm:$0xf] %vm584_vm10, %v567_v48  ;;  %599 = vst.msk [vmem:[#allocation4 + $0x38] sm:$0xf] %vm584_vm10, %v565_v3 }
 0x16d   : > { %v630_v58 = vpop.permute.xlu1 %629  ;;  %v628_v59 = vpop.permute.xlu0 %627  ;;  %v2722_v60 = vld [vmem:[#allocation4 + $0x28] sm:$0xff]  }
 0x16e   : > { %665 = vst.msk [vmem:[#allocation4 + $0x34] sm:$0xf] %vm651_vm11, %v630_v58  ;;  %664 = vst.msk [vmem:[#allocation4 + $0x30] sm:$0xf] %vm651_vm11, %v628_v59  ;;  %2554 = vmatmul.mubr.msk.bf16.gmra.mxu0 %vm1469_vm2, %v2722_v60 }
 0x171   : > { %v634_v61 = vpop.permute.xlu1 %633  ;;  %v632_v62 = vpop.permute.xlu0 %631 }
 0x172   : > { %667 = vst.msk [vmem:[#allocation4 + $0x3c] sm:$0xf] %vm651_vm11, %v634_v61  ;;  %666 = vst.msk [vmem:[#allocation4 + $0x38] sm:$0xf] %vm651_vm11, %v632_v62 }
 0x175   : > { %v890_v63 = vpop.permute.xlu1 %889  ;;  %v888_v0 = vpop.permute.xlu0 %887 }
 0x176   : > { %925 = vst.msk [vmem:[#allocation4 + $0x34] sm:$0xf] %vm911_vm12, %v890_v63  ;;  %924 = vst.msk [vmem:[#allocation4 + $0x30] sm:$0xf] %vm911_vm12, %v888_v0 }
 0x179   : > { %v894_v9 = vpop.permute.xlu1 %893  ;;  %v892_v11 = vpop.permute.xlu0 %891 }
 0x17a   : > { %927 = vst.msk [vmem:[#allocation4 + $0x3c] sm:$0xf] %vm911_vm12, %v894_v9  ;;  %926 = vst.msk [vmem:[#allocation4 + $0x38] sm:$0xf] %vm911_vm12, %v892_v11 }
 0x17d   : > { %v979_v36 = vpop.permute.xlu1 %978  ;;  %v977_v14 = vpop.permute.xlu0 %976 }
 0x17e   : > { %1014 = vst.msk [vmem:[#allocation4 + $0x34] sm:$0xf] %vm1000_vm13, %v979_v36  ;;  %1013 = vst.msk [vmem:[#allocation4 + $0x30] sm:$0xf] %vm1000_vm13, %v977_v14 }
 0x181   : > { %v983_v16 = vpop.permute.xlu1 %982  ;;  %v981_v12 = vpop.permute.xlu0 %980 }
 0x182   : > { %1016 = vst.msk [vmem:[#allocation4 + $0x3c] sm:$0xf] %vm1000_vm13, %v983_v16  ;;  %1015 = vst.msk [vmem:[#allocation4 + $0x38] sm:$0xf] %vm1000_vm13, %v981_v12 }
 0x185   : > { %v1068_v22 = vpop.permute.xlu1 %1067  ;;  %v1066_v17 = vpop.permute.xlu0 %1065 }
 0x186   : > { %1103 = vst.msk [vmem:[#allocation4 + $0x34] sm:$0xf] %vm1089_vm14, %v1068_v22  ;;  %1102 = vst.msk [vmem:[#allocation4 + $0x30] sm:$0xf] %vm1089_vm14, %v1066_v17 }
 0x189   : > { %v1072_v26 = vpop.permute.xlu1 %1071  ;;  %v1070_v13 = vpop.permute.xlu0 %1069 }
 0x18a   : > { %1105 = vst.msk [vmem:[#allocation4 + $0x3c] sm:$0xf] %vm1089_vm14, %v1072_v26  ;;  %1104 = vst.msk [vmem:[#allocation4 + $0x38] sm:$0xf] %vm1089_vm14, %v1070_v13 }
 0x18d   : > { %v1202_v28 = vpop.permute.xlu1 %1201  ;;  %v1200_v19 = vpop.permute.xlu0 %1199 }
 0x18e   : > { %1237 = vst.msk [vmem:[#allocation4 + $0x34] sm:$0xf] %vm1223_vm15, %v1202_v28  ;;  %1236 = vst.msk [vmem:[#allocation4 + $0x30] sm:$0xf] %vm1223_vm15, %v1200_v19 }
 0x191   : > { %v1206_v29 = vpop.permute.xlu1 %1205  ;;  %v1204_v25 = vpop.permute.xlu0 %1203 }
 0x192   : > { %1239 = vst.msk [vmem:[#allocation4 + $0x3c] sm:$0xf] %vm1223_vm15, %v1206_v29  ;;  %1238 = vst.msk [vmem:[#allocation4 + $0x38] sm:$0xf] %vm1223_vm15, %v1204_v25 }
 0x195   : > { %v1275_v5 = vpop.permute.xlu1 %1274  ;;  %v1273_v30 = vpop.permute.xlu0 %1272 }
 0x196   : > { %1310 = vst.msk [vmem:[#allocation4 + $0x34] sm:$0xf] %vm1296_vm0, %v1275_v5  ;;  %1309 = vst.msk [vmem:[#allocation4 + $0x30] sm:$0xf] %vm1296_vm0, %v1273_v30 }
 0x199   : > { %v1279_v7 = vpop.permute.xlu1 %1278  ;;  %v1277_v8 = vpop.permute.xlu0 %1276 }
 0x19a   : > { %1312 = vst.msk [vmem:[#allocation4 + $0x3c] sm:$0xf] %vm1296_vm0, %v1279_v7  ;;  %1311 = vst.msk [vmem:[#allocation4 + $0x38] sm:$0xf] %vm1296_vm0, %v1277_v8 }
 0x19d   : > { %v1348_v23 = vpop.permute.xlu1 %1347  ;;  %v1346_v32 = vpop.permute.xlu0 %1345 }
 0x19e   : > { %1383 = vst.msk [vmem:[#allocation4 + $0x34] sm:$0xf] %vm1369_vm1, %v1348_v23  ;;  %1382 = vst.msk [vmem:[#allocation4 + $0x30] sm:$0xf] %vm1369_vm1, %v1346_v32 }
 0x1a1   : > { %v1352_v33 = vpop.permute.xlu1 %1351  ;;  %v1350_v38 = vpop.permute.xlu0 %1349 }
 0x1a2   : > { %1385 = vst.msk [vmem:[#allocation4 + $0x3c] sm:$0xf] %vm1369_vm1, %v1352_v33  ;;  %1384 = vst.msk [vmem:[#allocation4 + $0x38] sm:$0xf] %vm1369_vm1, %v1350_v38 }
 0x1a5   : > { %v2723_v24 = vld [vmem:[#allocation4 + $0x30] sm:$0xff]  }
 0x1a6   : > { %2557 = vmatprep.mubr.msk.bf16.mxu0 %vm1469_vm2, %v2723_v24 }
 0x1a9   : > { %v2724_v10 = vld [vmem:[#allocation4 + $0x38] sm:$0xff]  }
 0x1aa   : > { %2558 = vmatmul.mubr.msk.bf16.gmra.mxu0 %vm1469_vm2, %v2724_v10 }
 0x1ae   : > { %v2547_v39 = vpop.f32.mrf.mxu0 }
 0x1af   : > { %v1541_v44 = vadd.f32 %v2547_v39, %v3786_v34 }
 0x1b0   : > { %v1532_v45 = vpop.f32.mrf.mxu0 }
 0x1b1   : > { %v1533_v6 = vadd.f32 %v3786_v34, %v1532_v45  ;;  %v3790_v18 = vmax.f32 %v1541_v44, 0.0 }
 0x1b2   : > { %v2548_v46 = vpop.f32.mrf.mxu0 }
 0x1b3   : > { %v3792_v40 = vmax.f32 %v1533_v6, 0.0  ;;  %v1544_v41 = vadd.f32 %v2548_v46, %v3786_v34  ;;  %v1613_v49 = vmul.f32 %v3790_v18, %v3790_v18 }
 0x1b4   : > { %v1535_v37 = vpop.f32.mrf.mxu0 }
 0x1b5   : > { %v1611_v2 = vmul.f32 %v3792_v40, %v3792_v40  ;;  %v1536_v47 = vadd.f32 %v3786_v34, %v1535_v37  ;;  %v3800_v42 = vmax.f32 %v1544_v41, 0.0  ;;  %v1634_v21 = vsel %vm1627_vm3, %v1613_v49, 0.0 }
 0x1b7   : > { %v3802_v35 = vmax.f32 %v1536_v47, 0.0  ;;  %v1628_v43 = vsel %vm1627_vm3, %v1611_v2, 0.0  ;;  %v1614_v52 = vmul.f32 %v3800_v42, %v3800_v42 }
 0x1b8   : > { %1629 = vadd.xlane.f32.xlu0 %v1628_v43 }
 0x1b9   : > { %v1612_v51 = vmul.f32 %v3802_v35, %v3802_v35  ;;  %v1637_v53 = vsel %vm1627_vm3, %v1614_v52, 0.0 }
 0x1bb   : > { %v1631_v20 = vsel %vm1627_vm3, %v1612_v51, 0.0 }
 0x1bc   : > { %1632 = vadd.xlane.f32.xlu1 %v1631_v20  ;;  %1635 = vadd.xlane.f32.xlu0 %v1634_v21 }
 0x1c0   : > { %1638 = vadd.xlane.f32.xlu0 %v1637_v53 }
 0x1ee   : > { %v2551_v4 = vpop.f32.mrf.mxu0 }
 0x1ef   : > { %v1557_v55 = vadd.f32 %v2551_v4, %v3786_v34 }
 0x1f0   : > { %v1548_v56 = vpop.f32.mrf.mxu0 }
 0x1f1   : > { %v1549_v27 = vadd.f32 %v3786_v34, %v1548_v56  ;;  %v3820_v57 = vmax.f32 %v1557_v55, 0.0 }
 0x1f2   : > { %v2552_v31 = vpop.f32.mrf.mxu0 }
 0x1f3   : > { %v3822_v1 = vmax.f32 %v1549_v27, 0.0  ;;  %v1560_v50 = vadd.f32 %v2552_v31, %v3786_v34  ;;  %v1617_v59 = vmul.f32 %v3820_v57, %v3820_v57 }
 0x1f4   : > { %v1551_v48 = vpop.f32.mrf.mxu0 }
 0x1f5   : > { %v1615_v3 = vmul.f32 %v3822_v1, %v3822_v1  ;;  %v1552_v58 = vadd.f32 %v3786_v34, %v1551_v48  ;;  %v3830_v60 = vmax.f32 %v1560_v50, 0.0  ;;  %v1646_v9 = vsel %vm1627_vm3, %v1617_v59, 0.0 }
 0x1f7   : > { %v3832_v61 = vmax.f32 %v1552_v58, 0.0  ;;  %v1640_v62 = vsel %vm1627_vm3, %v1615_v3, 0.0  ;;  %v1618_v0 = vmul.f32 %v3830_v60, %v3830_v60 }
 0x1f8   : > { %1641 = vadd.xlane.f32.xlu1 %v1640_v62 }
 0x1f9   : > { %v1616_v63 = vmul.f32 %v3832_v61, %v3832_v61  ;;  %v1649_v36 = vsel %vm1627_vm3, %v1618_v0, 0.0 }
 0x1fb   : > { %v1643_v11 = vsel %vm1627_vm3, %v1616_v63, 0.0 }
 0x1fc   : > { %1647 = vadd.xlane.f32.xlu1 %v1646_v9  ;;  %1644 = vadd.xlane.f32.xlu0 %v1643_v11 }
 0x200   : > { %1650 = vadd.xlane.f32.xlu0 %v1649_v36 }
 0x22e   : > { %v2555_v14 = vpop.f32.mrf.mxu0 }
 0x22f   : > { %v1573_v16 = vadd.f32 %v2555_v14, %v3786_v34 }
 0x230   : > { %v1564_v12 = vpop.f32.mrf.mxu0 }
 0x231   : > { %v1565_v22 = vadd.f32 %v3786_v34, %v1564_v12  ;;  %v3844_v26 = vmax.f32 %v1573_v16, 0.0 }
 0x232   : > { %v2556_v17 = vpop.f32.mrf.mxu0 }
 0x233   : > { %v3846_v13 = vmax.f32 %v1565_v22, 0.0  ;;  %v1576_v28 = vadd.f32 %v2556_v17, %v3786_v34  ;;  %v1621_v5 = vmul.f32 %v3844_v26, %v3844_v26 }
 0x234   : > { %v1567_v19 = vpop.f32.mrf.mxu0 }
 0x235   : > { %v1619_v29 = vmul.f32 %v3846_v13, %v3846_v13  ;;  %v1568_v25 = vadd.f32 %v3786_v34, %v1567_v19  ;;  %v3854_v30 = vmax.f32 %v1576_v28, 0.0  ;;  %v1658_v33 = vsel %vm1627_vm3, %v1621_v5, 0.0 }
 0x237   : > { %v3856_v7 = vmax.f32 %v1568_v25, 0.0  ;;  %v1652_v8 = vsel %vm1627_vm3, %v1619_v29, 0.0  ;;  %v1622_v32 = vmul.f32 %v3854_v30, %v3854_v30 }
 0x238   : > { %1653 = vadd.xlane.f32.xlu1 %v1652_v8 }
 0x239   : > { %v1620_v23 = vmul.f32 %v3856_v7, %v3856_v7  ;;  %v1661_v24 = vsel %vm1627_vm3, %v1622_v32, 0.0 }
 0x23b   : > { %v1655_v38 = vsel %vm1627_vm3, %v1620_v23, 0.0  ;;  %v2931_v23 = vmov 0.0  }
 0x23c   : > { %1659 = vadd.xlane.f32.xlu1 %v1658_v33  ;;  %1656 = vadd.xlane.f32.xlu0 %v1655_v38 }
 0x23d   : > { %2581 = vmatprep.subr.bf16.mxu1 %v2931_v23  ;;  %2601 = vmatprep.subr.bf16.mxu0 %v2931_v23 }
 0x23e   : > { %2617 = vmatprep.mubr.msk.bf16.mxu0 %vm2933_vm5, %v2931_v23 }
 0x240   : > { %1662 = vadd.xlane.f32.xlu0 %v1661_v24 }
 0x241   : > { %v1630_v10 = vpop.xlane.xlu0 %1629 }
 0x242   : > { %v1676_v39 = vmax.f32 %v1630_v10, 1e-24 }
 0x244   : > { %2727 = vrsqrt.f32 %v1676_v39 }
 0x245   : > { %v1633_v44 = vpop.xlane.xlu1 %1632  ;;  %v1636_v45 = vpop.xlane.xlu0 %1635 }
 0x246   : > { %v1677_v6 = vmax.f32 %v1633_v44, 1e-24  ;;  %v1678_v46 = vmax.f32 %v1636_v45, 1e-24 }
 0x248   : > { %2729 = vrsqrt.f32 %v1677_v6 }
 0x249   : > { %v1639_v41 = vpop.xlane.xlu0 %1638  ;;  %2731 = vrsqrt.f32 %v1678_v46 }
 0x24a   : > { %v1679_v37 = vmax.f32 %v1639_v41, 1e-24 }
 0x24c   : > { %2733 = vrsqrt.f32 %v1679_v37 }
 0x251   : > { %v2728_v2 = vpop.eup %2727 }
 0x252   : > { %v1708_v49 = vmul.f32 %v2728_v2, %v3792_v40 }
 0x255   : > { %v2730_v47 = vpop.eup %2729 }
 0x256   : > { %v1709_v43 = vmul.f32 %v2730_v47, %v3802_v35  ;;  %v2732_v51 = vpop.eup %2731 }
 0x257   : > { %v1710_v21 = vmul.f32 %v2732_v51, %v3790_v18 }
 0x258   : > { %v3868_v52 = vpack.c.bf16 %v1709_v43, %v1708_v49 }
 0x259   : > { %v2734_v20 = vpop.eup %2733 }
 0x25a   : > { %2565 = vmatprep.mubr.msk.bf16.mxu1 %vm1627_vm3, %v3868_v52  ;;  %v1711_v53 = vmul.f32 %v2734_v20, %v3800_v42 }
 0x25c   : > { %v3874_v54 = vpack.c.bf16 %v1711_v53, %v1710_v21 }
 0x25e   : > { %2566 = vmatmul.mubr.msk.bf16.vlgmr.msra.gmra.mxu1 %vm1627_vm3, %v3874_v54 }
 0x26a   : > { %v2559_v15 = vpop.f32.mrf.mxu0 }
 0x26b   : > { %v1589_v40 = vadd.f32 %v2559_v15, %v3786_v34 }
 0x26c   : > { %v1580_v35 = vpop.f32.mrf.mxu0 }
 0x26d   : > { %v1581_v4 = vadd.f32 %v3786_v34, %v1580_v35  ;;  %v3880_v56 = vmax.f32 %v1589_v40, 0.0 }
 0x26e   : > { %v2560_v55 = vpop.f32.mrf.mxu0 }
 0x26f   : > { %v3882_v27 = vmax.f32 %v1581_v4, 0.0  ;;  %v1592_v18 = vadd.f32 %v2560_v55, %v3786_v34  ;;  %v1625_v48 = vmul.f32 %v3880_v56, %v3880_v56 }
 0x270   : > { %v1583_v31 = vpop.f32.mrf.mxu0 }
 0x271   : > { %v1623_v42 = vmul.f32 %v3882_v27, %v3882_v27  ;;  %v1584_v50 = vadd.f32 %v3786_v34, %v1583_v31  ;;  %v3890_v3 = vmax.f32 %v1592_v18, 0.0  ;;  %v1670_v0 = vsel %vm1627_vm3, %v1625_v48, 0.0 }
 0x273   : > { %v3892_v58 = vmax.f32 %v1584_v50, 0.0  ;;  %v1664_v59 = vsel %vm1627_vm3, %v1623_v42, 0.0  ;;  %v1626_v63 = vmul.f32 %v3890_v3, %v3890_v3 }
 0x274   : > { %1665 = vadd.xlane.f32.xlu1 %v1664_v59 }
 0x275   : > { %v1624_v62 = vmul.f32 %v3892_v58, %v3892_v58  ;;  %v1673_v9 = vsel %vm1627_vm3, %v1626_v63, 0.0 }
 0x277   : > { %v1667_v34 = vsel %vm1627_vm3, %v1624_v62, 0.0 }
 0x278   : > { %1671 = vadd.xlane.f32.xlu1 %v1670_v0  ;;  %1668 = vadd.xlane.f32.xlu0 %v1667_v34 }
 0x27c   : > { %1674 = vadd.xlane.f32.xlu0 %v1673_v9 }
 0x281   : > { %v1642_v11 = vpop.xlane.xlu1 %1641 }
 0x282   : > { %v1680_v36 = vmax.f32 %v1642_v11, 1e-24 }
 0x284   : > { %2735 = vrsqrt.f32 %v1680_v36 }
 0x285   : > { %v1648_v14 = vpop.xlane.xlu1 %1647  ;;  %v1645_v16 = vpop.xlane.xlu0 %1644 }
 0x286   : > { %v1682_v12 = vmax.f32 %v1648_v14, 1e-24  ;;  %v1681_v22 = vmax.f32 %v1645_v16, 1e-24 }
 0x288   : > { %2737 = vrsqrt.f32 %v1681_v22 }
 0x289   : > { %v1651_v17 = vpop.xlane.xlu0 %1650  ;;  %2739 = vrsqrt.f32 %v1682_v12 }
 0x28a   : > { %v1683_v28 = vmax.f32 %v1651_v17, 1e-24 }
 0x28c   : > { %2741 = vrsqrt.f32 %v1683_v28 }
 0x291   : > { %v2736_v19 = vpop.eup %2735 }
 0x292   : > { %v1712_v5 = vmul.f32 %v2736_v19, %v3822_v1 }
 0x295   : > { %v2738_v29 = vpop.eup %2737 }
 0x296   : > { %v2740_v25 = vpop.eup %2739  ;;  %v1713_v8 = vmul.f32 %v2738_v29, %v3832_v61 }
 0x297   : > { %v1714_v38 = vmul.f32 %v2740_v25, %v3820_v57 }
 0x298   : > { %v3906_v33 = vpack.c.bf16 %v1713_v8, %v1712_v5 }
 0x299   : > { %v2742_v32 = vpop.eup %2741 }
 0x29a   : > { %v1715_v24 = vmul.f32 %v2742_v32, %v3830_v60  ;;  %2569 = vmatprep.mubr.msk.bf16.mxu1 %vm1627_vm3, %v3906_v33 }
 0x29c   : > { %v3912_v10 = vpack.c.bf16 %v1715_v24, %v1714_v38 }
 0x29e   : > { %2570 = vmatmul.mubr.msk.bf16.gmra.mxu1 %vm1627_vm3, %v3912_v10 }
 0x2c1   : > { %v1654_v1 = vpop.xlane.xlu1 %1653 }
 0x2c2   : > { %v1684_v61 = vmax.f32 %v1654_v1, 1e-24 }
 0x2c4   : > { %2743 = vrsqrt.f32 %v1684_v61 }
 0x2c5   : > { %v1660_v39 = vpop.xlane.xlu1 %1659  ;;  %v1657_v44 = vpop.xlane.xlu0 %1656 }
 0x2c6   : > { %v1686_v45 = vmax.f32 %v1660_v39, 1e-24  ;;  %v1685_v6 = vmax.f32 %v1657_v44, 1e-24 }
 0x2c8   : > { %2745 = vrsqrt.f32 %v1685_v6 }
 0x2c9   : > { %v1663_v46 = vpop.xlane.xlu0 %1662  ;;  %2747 = vrsqrt.f32 %v1686_v45 }
 0x2ca   : > { %v1687_v57 = vmax.f32 %v1663_v46, 1e-24 }
 0x2cc   : > { %2749 = vrsqrt.f32 %v1687_v57 }
 0x2d1   : > { %v2744_v60 = vpop.eup %2743 }
 0x2d2   : > { %v1716_v2 = vmul.f32 %v2744_v60, %v3846_v13 }
 0x2d5   : > { %v2746_v41 = vpop.eup %2745 }
 0x2d6   : > { %v2748_v37 = vpop.eup %2747  ;;  %v1717_v47 = vmul.f32 %v2746_v41, %v3856_v7 }
 0x2d7   : > { %v1718_v51 = vmul.f32 %v2748_v37, %v3844_v26 }
 0x2d8   : > { %v1728_v43 = vpack.c.bf16 %v1717_v47, %v1716_v2 }
 0x2d9   : > { %v2750_v49 = vpop.eup %2749 }
 0x2da   : > { %v1719_v20 = vmul.f32 %v2750_v49, %v3854_v30  ;;  %2573 = vmatprep.mubr.msk.bf16.mxu1 %vm1627_vm3, %v1728_v43 }
 0x2dc   : > { %v1729_v21 = vpack.c.bf16 %v1719_v20, %v1718_v51 }
 0x2de   : > { %2574 = vmatmul.mubr.msk.bf16.gmra.mxu1 %vm1627_vm3, %v1729_v21 }
 0x2fd   : > { %v1666_v53 = vpop.xlane.xlu1 %1665 }
 0x2fe   : > { %v1688_v15 = vmax.f32 %v1666_v53, 1e-24 }
 0x300   : > { %2751 = vrsqrt.f32 %v1688_v15 }
 0x301   : > { %v1672_v40 = vpop.xlane.xlu1 %1671  ;;  %v1669_v35 = vpop.xlane.xlu0 %1668 }
 0x302   : > { %v1690_v4 = vmax.f32 %v1672_v40, 1e-24  ;;  %v1689_v55 = vmax.f32 %v1669_v35, 1e-24 }
 0x304   : > { %2753 = vrsqrt.f32 %v1689_v55 }
 0x305   : > { %v1675_v13 = vpop.xlane.xlu0 %1674  ;;  %2755 = vrsqrt.f32 %v1690_v4 }
 0x306   : > { %v1691_v7 = vmax.f32 %v1675_v13, 1e-24 }
 0x308   : > { %2757 = vrsqrt.f32 %v1691_v7 }
 0x30d   : > { %v2752_v26 = vpop.eup %2751 }
 0x30e   : > { %v1720_v31 = vmul.f32 %v2752_v26, %v3882_v27  ;;  %v3932_v27 = vld [vmem:[%s4194_s6] ss:$0 sm:$0xff] }
 0x311   : > { %v2754_v18 = vpop.eup %2753 }
 0x312   : > { %v2756_v30 = vpop.eup %2755  ;;  %v1721_v42 = vmul.f32 %v2754_v18, %v3892_v58 }
 0x313   : > { %v1722_v59 = vmul.f32 %v2756_v30, %v3880_v56 }
 0x314   : > { %v1730_v48 = vpack.c.bf16 %v1721_v42, %v1720_v31 }
 0x315   : > { %v2758_v50 = vpop.eup %2757 }
 0x316   : > { %v1723_v62 = vmul.f32 %v2758_v50, %v3890_v3  ;;  %2577 = vmatprep.mubr.msk.bf16.mxu1 %vm1627_vm3, %v1730_v48 }
 0x318   : > { %v1731_v63 = vpack.c.bf16 %v1723_v62, %v1722_v59 }
 0x31a   : > { %2578 = vmatmul.mubr.msk.bf16.gmra.mxu1 %vm1627_vm3, %v1731_v63 }
 0x31b   : > { %2582 = vmatpush3.bf16.msra.mxu1 %v1731_v63  ;;  %2597 = vmatprep.mubr.msk.bf16.mxu1 %vm2933_vm5, %v2931_v23 }
 0x31c   : > { %2583 = vmatprep.subr.bf16.mxu1 %v2931_v23 }
 0x31e   : > { %v2567_v58 = vpop.f32.mrf.mxu1 }
 0x31f   : > { %2584 = vmatpush3.bf16.msra.mxu1 %v1730_v48  ;;  %v3935_v56 = vadd.f32 %v2567_v58, %v3932_v27 }
 0x320   : > { %2585 = vmatprep.subr.bf16.mxu1 %v2931_v23  ;;  %v1813_v3 = vpop.f32.mrf.mxu1 }
 0x321   : > { %v3939_v0 = vadd.f32 %v3932_v27, %v1813_v3  ;;  %v1883_v34 = vsel %vm1876_vm4, %v3935_v56, -inf }
 0x322   : > { %1884 = vmax.xlane.f32.xlu1 %v1883_v34  ;;  %v2568_v9 = vpop.f32.mrf.mxu1 }
 0x323   : > { %2586 = vmatpush3.bf16.msra.mxu1 %v1729_v21  ;;  %v1825_v11 = vadd.f32 %v2568_v9, %v3932_v27  ;;  %v1877_v12 = vsel %vm1876_vm4, %v3939_v0, -inf }
 0x324   : > { %2587 = vmatprep.subr.bf16.mxu1 %v2931_v23  ;;  %v1816_v36 = vpop.f32.mrf.mxu1 }
 0x325   : > { %v3946_v14 = vadd.f32 %v3932_v27, %v1816_v36  ;;  %v1886_v16 = vsel %vm1876_vm4, %v1825_v11, -inf }
 0x326   : > { %1887 = vmax.xlane.f32.xlu0 %v1886_v16  ;;  %1878 = vmax.xlane.f32.xlu1 %v1877_v12 }
 0x327   : > { %2588 = vmatpush3.bf16.msra.mxu1 %v1728_v43  ;;  %v1880_v22 = vsel %vm1876_vm4, %v3946_v14, -inf }
 0x328   : > { %2589 = vmatprep.subr.bf16.mxu1 %v2931_v23 }
 0x32a   : > { %1881 = vmax.xlane.f32.xlu0 %v1880_v22 }
 0x32b   : > { %2590 = vmatpush3.bf16.msra.mxu1 %v3912_v10 }
 0x32c   : > { %2591 = vmatprep.subr.bf16.mxu1 %v2931_v23 }
 0x32f   : > { %2592 = vmatpush3.bf16.msra.mxu1 %v3906_v33 }
 0x330   : > { %2593 = vmatprep.subr.bf16.mxu1 %v2931_v23 }
 0x333   : > { %2594 = vmatpush3.bf16.msra.mxu1 %v3874_v54 }
 0x334   : > { %2595 = vmatprep.subr.bf16.mxu1 %v2931_v23 }
 0x337   : > { %2596 = vmatpush3.bf16.msra.mxu1 %v3868_v52 }
 0x35e   : > { %v2571_v17 = vpop.f32.mrf.mxu1 }
 0x35f   : > { %v3962_v28 = vadd.f32 %v2571_v17, %v3932_v27 }
 0x360   : > { %v1829_v19 = vpop.f32.mrf.mxu1 }
 0x361   : > { %v3965_v29 = vadd.f32 %v3932_v27, %v1829_v19  ;;  %v1895_v25 = vsel %vm1876_vm4, %v3962_v28, -inf }
 0x362   : > { %1896 = vmax.xlane.f32.xlu1 %v1895_v25  ;;  %v2572_v5 = vpop.f32.mrf.mxu1 }
 0x363   : > { %v3970_v8 = vadd.f32 %v2572_v5, %v3932_v27  ;;  %v1889_v33 = vsel %vm1876_vm4, %v3965_v29, -inf }
 0x364   : > { %v1832_v54 = vpop.f32.mrf.mxu1 }
 0x365   : > { %v3973_v32 = vadd.f32 %v3932_v27, %v1832_v54  ;;  %v1898_v52 = vsel %vm1876_vm4, %v3970_v8, -inf }
 0x366   : > { %1899 = vmax.xlane.f32.xlu0 %v1898_v52  ;;  %1890 = vmax.xlane.f32.xlu1 %v1889_v33 }
 0x367   : > { %v1892_v38 = vsel %vm1876_vm4, %v3973_v32, -inf }
 0x36a   : > { %1893 = vmax.xlane.f32.xlu0 %v1892_v38 }
 0x39e   : > { %v2575_v24 = vpop.f32.mrf.mxu1 }
 0x39f   : > { %v3982_v10 = vadd.f32 %v2575_v24, %v3932_v27 }
 0x3a0   : > { %v1845_v1 = vpop.f32.mrf.mxu1 }
 0x3a1   : > { %v3985_v61 = vadd.f32 %v3932_v27, %v1845_v1  ;;  %v1907_v39 = vsel %vm1876_vm4, %v3982_v10, -inf }
 0x3a2   : > { %1908 = vmax.xlane.f32.xlu1 %v1907_v39  ;;  %v2576_v44 = vpop.f32.mrf.mxu1 }
 0x3a3   : > { %v3990_v45 = vadd.f32 %v2576_v44, %v3932_v27  ;;  %v1901_v60 = vsel %vm1876_vm4, %v3985_v61, -inf }
 0x3a4   : > { %v1848_v6 = vpop.f32.mrf.mxu1 }
 0x3a5   : > { %v3993_v46 = vadd.f32 %v3932_v27, %v1848_v6  ;;  %v1910_v57 = vsel %vm1876_vm4, %v3990_v45, -inf }
 0x3a6   : > { %1911 = vmax.xlane.f32.xlu0 %v1910_v57  ;;  %1902 = vmax.xlane.f32.xlu1 %v1901_v60 }
 0x3a7   : > { %v1904_v41 = vsel %vm1876_vm4, %v3993_v46, -inf }
 0x3aa   : > { %1905 = vmax.xlane.f32.xlu0 %v1904_v41 }
 0x3ab   : > { %v1885_v37 = vpop.xlane.xlu1 %1884 }
 0x3ac   : > { %v1927_v47 = vsub.f32 %v3935_v56, %v1885_v37 }
 0x3ae   : > { %v1945_v51 = vmul.f32 1.442695, %v1927_v47 }
 0x3af   : > { %v1888_v2 = vpop.xlane.xlu0 %1887  ;;  %v1879_v49 = vpop.xlane.xlu1 %1878 }
 0x3b0   : > { %v1925_v43 = vsub.f32 %v3939_v0, %v1879_v49  ;;  %v1928_v20 = vsub.f32 %v1825_v11, %v1888_v2  ;;  %2759 = vpow2.f32 %v1945_v51 }
 0x3b2   : > { %v1941_v53 = vmul.f32 1.442695, %v1925_v43  ;;  %v1947_v15 = vmul.f32 1.442695, %v1928_v20 }
 0x3b3   : > { %v1882_v21 = vpop.xlane.xlu0 %1881 }
 0x3b4   : > { %v1926_v40 = vsub.f32 %v3946_v14, %v1882_v21  ;;  %2761 = vpow2.f32 %v1941_v53 }
 0x3b5   : > { %2763 = vpow2.f32 %v1947_v15 }
 0x3b6   : > { %v1943_v4 = vmul.f32 1.442695, %v1926_v40 }
 0x3b8   : > { %2765 = vpow2.f32 %v1943_v4 }
 0x3bd   : > { %v4022_v59 = vpop.eup %2759 }
 0x3be   : > { %v1979_v58 = vsel %vm1876_vm4, %v4022_v59, 0.0 }
 0x3c1   : > { %v4024_v62 = vpop.eup %2761 }
 0x3c2   : > { %v1973_v56 = vsel %vm1876_vm4, %v4024_v62, 0.0 }
 0x3da   : > { %v2579_v35 = vpop.f32.mrf.mxu1 }
 0x3db   : > { %v4008_v26 = vadd.f32 %v2579_v35, %v3932_v27 }
 0x3dc   : > { %v1861_v55 = vpop.f32.mrf.mxu1 }
 0x3dd   : > { %v4005_v13 = vadd.f32 %v3932_v27, %v1861_v55  ;;  %v1919_v48 = vsel %vm1876_vm4, %v4008_v26, -inf }
 0x3de   : > { %v2580_v7 = vpop.f32.mrf.mxu1 }
 0x3df   : > { %v1913_v18 = vsel %vm1876_vm4, %v4005_v13, -inf  ;;  %v4016_v42 = vadd.f32 %v2580_v7, %v3932_v27 }
 0x3e0   : > { %v1864_v30 = vpop.f32.mrf.mxu1  ;;  %1914 = vmax.xlane.f32.xlu1 %v1913_v18 }
 0x3e1   : > { %v4013_v31 = vadd.f32 %v3932_v27, %v1864_v30  ;;  %v1922_v63 = vsel %vm1876_vm4, %v4016_v42, -inf  ;;  %v4030_v27 = vpop.eup %2763 }
 0x3e2   : > { %v1982_v3 = vsel %vm1876_vm4, %v4030_v27, 0.0  ;;  %v4036_v0 = vpop.eup %2765 }
 0x3e3   : > { %v1916_v50 = vsel %vm1876_vm4, %v4013_v31, -inf  ;;  %v1976_v36 = vsel %vm1876_vm4, %v4036_v0, 0.0 }
 0x3e4   : > { %1917 = vmax.xlane.f32.xlu0 %v1916_v50  ;;  %1920 = vmax.xlane.f32.xlu1 %v1919_v48 }
 0x3e8   : > { %1923 = vmax.xlane.f32.xlu0 %v1922_v63  ;;  %1980 = vadd.xlane.f32.xlu1 %v1979_v58 }
 0x3eb   : > { %v1897_v34 = vpop.xlane.xlu1 %1896 }
 0x3ec   : > { %1974 = vadd.xlane.f32.xlu1 %v1973_v56  ;;  %1983 = vadd.xlane.f32.xlu0 %v1982_v3  ;;  %v1931_v9 = vsub.f32 %v3962_v28, %v1897_v34 }
 0x3ee   : > { %v1953_v11 = vmul.f32 1.442695, %v1931_v9 }
 0x3ef   : > { %v1891_v14 = vpop.xlane.xlu1 %1890  ;;  %v1900_v16 = vpop.xlane.xlu0 %1899 }
 0x3f0   : > { %1977 = vadd.xlane.f32.xlu0 %v1976_v36  ;;  %2767 = vpow2.f32 %v1953_v11  ;;  %v1929_v12 = vsub.f32 %v3965_v29, %v1891_v14  ;;  %v1932_v22 = vsub.f32 %v3970_v8, %v1900_v16 }
 0x3f2   : > { %v1949_v17 = vmul.f32 1.442695, %v1929_v12  ;;  %v1955_v19 = vmul.f32 1.442695, %v1932_v22 }
 0x3f3   : > { %v1894_v25 = vpop.xlane.xlu0 %1893 }
 0x3f4   : > { %2769 = vpow2.f32 %v1949_v17  ;;  %v1930_v5 = vsub.f32 %v3973_v32, %v1894_v25  ;;  %v2932_v25 = vmov 1065369472  }
 0x3f5   : > { %2771 = vpow2.f32 %v1955_v19  ;;  %2602 = vmatpush3.bf16.msra.mxu0 %v2932_v25 }
 0x3f6   : > { %v1951_v28 = vmul.f32 1.442695, %v1930_v5  ;;  %2603 = vmatprep.subr.bf16.mxu0 %v2931_v23 }
 0x3f8   : > { %2773 = vpow2.f32 %v1951_v28 }
 0x3f9   : > { %2604 = vmatpush3.bf16.msra.mxu0 %v2932_v25 }
 0x3fa   : > { %2605 = vmatprep.subr.bf16.mxu0 %v2931_v23 }
 0x3fd   : > { %v4044_v54 = vpop.eup %2767  ;;  %2606 = vmatpush3.bf16.msra.mxu0 %v2932_v25 }
 0x3fe   : > { %v1991_v52 = vsel %vm1876_vm4, %v4044_v54, 0.0  ;;  %2607 = vmatprep.subr.bf16.mxu0 %v2931_v23 }
 0x3ff   : > { %1992 = vadd.xlane.f32.xlu1 %v1991_v52 }
 0x401   : > { %v4048_v33 = vpop.eup %2769  ;;  %2608 = vmatpush3.bf16.msra.mxu0 %v2932_v25 }
 0x402   : > { %v4050_v29 = vpop.eup %2771  ;;  %v1985_v8 = vsel %vm1876_vm4, %v4048_v33, 0.0  ;;  %2609 = vmatprep.subr.bf16.mxu0 %v2931_v23 }
 0x403   : > { %1986 = vadd.xlane.f32.xlu1 %v1985_v8  ;;  %v1994_v32 = vsel %vm1876_vm4, %v4050_v29, 0.0 }
 0x404   : > { %1995 = vadd.xlane.f32.xlu0 %v1994_v32 }
 0x405   : > { %v4056_v38 = vpop.eup %2773  ;;  %2610 = vmatpush3.bf16.msra.mxu0 %v2932_v25 }
 0x406   : > { %v1988_v24 = vsel %vm1876_vm4, %v4056_v38, 0.0  ;;  %2611 = vmatprep.subr.bf16.mxu0 %v2931_v23 }
 0x408   : > { %1989 = vadd.xlane.f32.xlu0 %v1988_v24 }
 0x409   : > { %2612 = vmatpush3.bf16.msra.mxu0 %v2932_v25 }
 0x40a   : > { %2613 = vmatprep.subr.bf16.mxu0 %v2931_v23 }
 0x40d   : > { %2614 = vmatpush3.bf16.msra.mxu0 %v2932_v25 }
 0x40e   : > { %2615 = vmatprep.subr.bf16.mxu0 %v2931_v23 }
 0x411   : > { %2616 = vmatpush3.bf16.msra.mxu0 %v2932_v25 }
 0x42b   : > { %v1909_v1 = vpop.xlane.xlu1 %1908 }
 0x42c   : > { %v1935_v39 = vsub.f32 %v3982_v10, %v1909_v1 }
 0x42e   : > { %v1961_v44 = vmul.f32 1.442695, %v1935_v39 }
 0x42f   : > { %v1903_v6 = vpop.xlane.xlu1 %1902  ;;  %v1912_v57 = vpop.xlane.xlu0 %1911 }
 0x430   : > { %2775 = vpow2.f32 %v1961_v44  ;;  %v1933_v60 = vsub.f32 %v3985_v61, %v1903_v6  ;;  %v1936_v41 = vsub.f32 %v3990_v45, %v1912_v57 }
 0x432   : > { %v1957_v37 = vmul.f32 1.442695, %v1933_v60  ;;  %v1963_v2 = vmul.f32 1.442695, %v1936_v41 }
 0x433   : > { %v1906_v47 = vpop.xlane.xlu0 %1905 }
 0x434   : > { %2777 = vpow2.f32 %v1957_v37  ;;  %v1934_v49 = vsub.f32 %v3993_v46, %v1906_v47 }
 0x435   : > { %2779 = vpow2.f32 %v1963_v2 }
 0x436   : > { %v1959_v43 = vmul.f32 1.442695, %v1934_v49 }
 0x438   : > { %2781 = vpow2.f32 %v1959_v43 }
 0x43d   : > { %v4064_v51 = vpop.eup %2775 }
 0x43e   : > { %v2003_v10 = vsel %vm1876_vm4, %v4064_v51, 0.0 }
 0x43f   : > { %2004 = vadd.xlane.f32.xlu1 %v2003_v10 }
 0x441   : > { %v4068_v20 = vpop.eup %2777 }
 0x442   : > { %v4070_v61 = vpop.eup %2779  ;;  %v1997_v45 = vsel %vm1876_vm4, %v4068_v20, 0.0 }
 0x443   : > { %1998 = vadd.xlane.f32.xlu1 %v1997_v45  ;;  %v2006_v46 = vsel %vm1876_vm4, %v4070_v61, 0.0 }
 0x444   : > { %2007 = vadd.xlane.f32.xlu0 %v2006_v46 }
 0x445   : > { %v4076_v21 = vpop.eup %2781 }
 0x446   : > { %v2000_v53 = vsel %vm1876_vm4, %v4076_v21, 0.0 }
 0x448   : > { %2001 = vadd.xlane.f32.xlu0 %v2000_v53 }
 0x469   : > { %v1915_v15 = vpop.xlane.xlu1 %1914 }
 0x46a   : > { %v1937_v40 = vsub.f32 %v4005_v13, %v1915_v15 }
 0x46c   : > { %v1965_v35 = vmul.f32 1.442695, %v1937_v40 }
 0x46d   : > { %v1921_v4 = vpop.xlane.xlu1 %1920  ;;  %v1918_v55 = vpop.xlane.xlu0 %1917 }
 0x46e   : > { %2783 = vpow2.f32 %v1965_v35  ;;  %v1939_v7 = vsub.f32 %v4008_v26, %v1921_v4  ;;  %v1938_v18 = vsub.f32 %v4013_v31, %v1918_v55 }
 0x470   : > { %v1969_v30 = vmul.f32 1.442695, %v1939_v7  ;;  %v1967_v50 = vmul.f32 1.442695, %v1938_v18 }
 0x471   : > { %v1924_v48 = vpop.xlane.xlu0 %1923  ;;  %v1981_v36 = vpop.xlane.xlu1 %1980 }
 0x472   : > { %2785 = vpow2.f32 %v1969_v30  ;;  %v1940_v63 = vsub.f32 %v4016_v42, %v1924_v48 }
 0x473   : > { %2787 = vpow2.f32 %v1967_v50 }
 0x474   : > { %v1971_v58 = vmul.f32 1.442695, %v1940_v63 }
 0x475   : > { %v1984_v11 = vpop.xlane.xlu0 %1983  ;;  %v1975_v16 = vpop.xlane.xlu1 %1974 }
 0x476   : > { %2789 = vpow2.f32 %v1971_v58 }
 0x479   : > { %v1978_v14 = vpop.xlane.xlu0 %1977 }
 0x47a   : > { %2791 = vrcp.f32 %v1978_v14 }
 0x47b   : > { %v4084_v56 = vpop.eup %2783  ;;  %2793 = vrcp.f32 %v1975_v16 }
 0x47c   : > { %v2009_v13 = vsel %vm1876_vm4, %v4084_v56, 0.0  ;;  %2795 = vrcp.f32 %v1984_v11 }
 0x47d   : > { %2010 = vadd.xlane.f32.xlu1 %v2009_v13  ;;  %2797 = vrcp.f32 %v1981_v36 }
 0x47f   : > { %v4088_v3 = vpop.eup %2785 }
 0x480   : > { %v4090_v26 = vpop.eup %2787  ;;  %v2015_v31 = vsel %vm1876_vm4, %v4088_v3, 0.0 }
 0x481   : > { %2016 = vadd.xlane.f32.xlu1 %v2015_v31  ;;  %v2012_v42 = vsel %vm1876_vm4, %v4090_v26, 0.0 }
 0x482   : > { %2013 = vadd.xlane.f32.xlu0 %v2012_v42  ;;  %v2061_v42 = vld [vmem:[#allocation2] sm:$0xff] }
 0x483   : > { %v4096_v34 = vpop.eup %2789 }
 0x484   : > { %v2018_v9 = vsel %vm1876_vm4, %v4096_v34, 0.0 }
 0x486   : > { %2019 = vadd.xlane.f32.xlu0 %v2018_v9  ;;  %v2120_v9 = vld [vmem:[#allocation3] sm:$0xff] }
 0x487   : > { %v2792_v5 = vpop.eup %2791 }
 0x488   : > { %v1993_v22 = vpop.xlane.xlu1 %1992  ;;  %v2794_v28 = vpop.eup %2793  ;;  %v2024_v52 = vmul.f32 %v2792_v5, %v4036_v0 }
 0x489   : > { %v2796_v8 = vpop.eup %2795  ;;  %v2022_v32 = vmul.f32 %v2794_v28, %v4024_v62 }
 0x48a   : > { %v2798_v24 = vpop.eup %2797  ;;  %v2028_v39 = vmul.f32 %v2796_v8, %v4030_v27 }
 0x48b   : > { %v2053_v1 = vpack.c.bf16 %v2024_v52, %v2022_v32  ;;  %v2026_v6 = vmul.f32 %v2798_v24, %v4022_v59 }
 0x48c   : > { %v1987_v19 = vpop.xlane.xlu1 %1986 }
 0x48d   : > { %v1996_v12 = vpop.xlane.xlu0 %1995  ;;  %v2054_v60 = vpack.c.bf16 %v2028_v39, %v2026_v6 }
 0x491   : > { %v1990_v17 = vpop.xlane.xlu0 %1989 }
 0x492   : > { %2799 = vrcp.f32 %v1990_v17 }
 0x493   : > { %2801 = vrcp.f32 %v1987_v19 }
 0x494   : > { %2803 = vrcp.f32 %v1996_v12 }
 0x495   : > { %2805 = vrcp.f32 %v1993_v22 }
 0x49f   : > { %v2800_v44 = vpop.eup %2799 }
 0x4a0   : > { %v2802_v57 = vpop.eup %2801  ;;  %v2032_v0 = vmul.f32 %v2800_v44, %v4056_v38 }
 0x4a1   : > { %v2804_v41 = vpop.eup %2803  ;;  %v2030_v62 = vmul.f32 %v2802_v57, %v4048_v33 }
 0x4a2   : > { %v2806_v37 = vpop.eup %2805  ;;  %v2036_v2 = vmul.f32 %v2804_v41, %v4050_v29 }
 0x4a3   : > { %v2055_v27 = vpack.c.bf16 %v2032_v0, %v2030_v62  ;;  %v2034_v59 = vmul.f32 %v2806_v37, %v4044_v54 }
 0x4a5   : > { %v2056_v47 = vpack.c.bf16 %v2036_v2, %v2034_v59 }
 0x4ae   : > { %2062 = vxpose.xlu1.c.b16.start [1/8] (narrow) %v2053_v1, 16 }
 0x4b2   : > { %2063 = vxpose.xlu1.c.b16.cont [2/8] (narrow) %v2054_v60, 16 }
 0x4b6   : > { %2064 = vxpose.xlu1.c.b16.cont [3/8] (narrow) %v2055_v27, 16 }
 0x4ba   : > { %2065 = vxpose.xlu1.c.b16.cont [4/8] (narrow) %v2056_v47, 16 }
 0x4c8   : > { %v2005_v33 = vpop.xlane.xlu1 %2004 }
 0x4cc   : > { %v1999_v38 = vpop.xlane.xlu1 %1998 }
 0x4cd   : > { %v2008_v49 = vpop.xlane.xlu0 %2007  ;;  %2807 = vrcp.f32 %v1999_v38 }
 0x4ce   : > { %2809 = vrcp.f32 %v2008_v49 }
 0x4d1   : > { %v2002_v29 = vpop.xlane.xlu0 %2001 }
 0x4d2   : > { %2811 = vrcp.f32 %v2002_v29 }
 0x4d3   : > { %2813 = vrcp.f32 %v2005_v33 }
 0x4da   : > { %v2808_v43 = vpop.eup %2807 }
 0x4db   : > { %v2810_v10 = vpop.eup %2809  ;;  %v2038_v45 = vmul.f32 %v2808_v43, %v4068_v20 }
 0x4dc   : > { %v2044_v23 = vmul.f32 %v2810_v10, %v4070_v61 }
 0x4df   : > { %v2812_v54 = vpop.eup %2811 }
 0x4e0   : > { %v2040_v46 = vmul.f32 %v2812_v54, %v4076_v21  ;;  %v2814_v53 = vpop.eup %2813 }
 0x4e1   : > { %v2042_v40 = vmul.f32 %v2814_v53, %v4064_v51 }
 0x4e2   : > { %v2057_v15 = vpack.c.bf16 %v2040_v46, %v2038_v45 }
 0x4e3   : > { %v2058_v35 = vpack.c.bf16 %v2044_v23, %v2042_v40 }
 0x4e4   : > { %2066 = vxpose.xlu1.c.b16.cont [5/8] (narrow) %v2057_v15, 16 }
 0x4e8   : > { %2067 = vxpose.xlu1.c.b16.cont [6/8] (narrow) %v2058_v35, 16 }
 0x506   : > { %v2011_v4 = vpop.xlane.xlu1 %2010 }
 0x507   : > { %2815 = vrcp.f32 %v2011_v4 }
 0x50a   : > { %v2017_v55 = vpop.xlane.xlu1 %2016 }
 0x50b   : > { %v2014_v7 = vpop.xlane.xlu0 %2013 }
 0x50c   : > { %2817 = vrcp.f32 %v2014_v7 }
 0x50d   : > { %2819 = vrcp.f32 %v2017_v55 }
 0x50f   : > { %v2020_v18 = vpop.xlane.xlu0 %2019 }
 0x510   : > { %2821 = vrcp.f32 %v2020_v18 }
 0x514   : > { %v2816_v20 = vpop.eup %2815 }
 0x515   : > { %v2046_v21 = vmul.f32 %v2816_v20, %v4084_v56 }
 0x519   : > { %v2818_v30 = vpop.eup %2817 }
 0x51a   : > { %v2048_v50 = vmul.f32 %v2818_v30, %v4090_v26  ;;  %v2820_v61 = vpop.eup %2819 }
 0x51b   : > { %v2050_v51 = vmul.f32 %v2820_v61, %v4088_v3 }
 0x51c   : > { %v2059_v48 = vpack.c.bf16 %v2048_v50, %v2046_v21 }
 0x51d   : > { %v2822_v63 = vpop.eup %2821 }
 0x51e   : > { %2068 = vxpose.xlu1.c.b16.cont [7/8] (narrow) %v2059_v48, 16  ;;  %v2052_v58 = vmul.f32 %v2822_v63, %v4096_v34 }
 0x520   : > { %v2060_v13 = vpack.c.bf16 %v2052_v58, %v2050_v51 }
 0x522   : > { %2069 = vxpose.xlu1.c.b16.end [8/8] (narrow) %v2060_v13, 16 }
 0x568   : > { %v2070_v31 = vpop.trf.xlu1 }
 0x569   : > { %2598 = vmatmul.mubr.bf16.vlgmr.msra.gmra.mxu1 %v2070_v31  ;;  %2618 = vmatmul.mubr.bf16.vlgmr.msra.gmra.mxu0 %v2070_v31 }
 0x629   : > { %v2112_v11 = vpop.f32.mrf.mxu1  ;;  %v2155_v36 = vpop.f32.mrf.mxu0 }
 0x62a   : > { %v2118_v56 = vadd.f32 %v2112_v11, %v2061_v42  ;;  %v2161_v14 = vadd.f32 %v2155_v36, %v2120_v9 }
 0x62b   : > { %v2599_v26 = vpop.f32.mrf.mxu1  ;;  %v2619_v16 = vpop.f32.mrf.mxu0  ;;  %2166 = sbr.rel (%p2481_p4) target bundleno = 2185 (0x889), region = 60 }
 0x62c   : > { %2119 = vst.msk [vmem:[#allocation2] sm:$0xff] %vm1627_vm3, %v2118_v56 }
 0x62d   : > { %2162 = vst.msk [vmem:[#allocation3] sm:$0xff] %vm1876_vm4, %v2161_v14  ;;  %v2115_v3 = vpop.f32.mrf.mxu1  ;;  %v2158_v12 = vpop.f32.mrf.mxu0 }
 0x62f   : > { %v2600_v34 = vpop.f32.mrf.mxu1  ;;  %v2620_v22 = vpop.f32.mrf.mxu0 }
 0x630   : > { %v2934_v19 = vmov 0   ;;  %v2169_v25 = vld [vmem:[%s4195_s7] sm:$0xff]  ;;  %v2197_v33 = vlaneseq  ;;  %v2935_v38 = vmov 1966171168  }
 0x631   : > { %2823 = vset.pattern.permute.xlu0 %v2934_v19  ;;  %v2204_v49 = vunpack.c.l.s4 %v2935_v38 }
 0x632   : > { %v2207_v43 = vshrl.u32 %v2197_v33, 7  ;;  %vm2199_vm6 = vcmp.lt.s32.totalorder %v2197_v33, 32  ;;  %vm2228_vm7 = vcmp.ge.s32.totalorder %v2197_v33, 32  ;;  %vm2229_vm8 = vcmp.lt.s32.totalorder %v2197_v33, 64 }
 0x633   : > { %v2168_v5 = vld [vmem:[#allocation2] sm:$0xff]  ;;  %v2205_v29 = vunpack.c.0.s8 %v2204_v49  ;;  %vm2230_vm9 = vmand %vm2228_vm7, %vm2229_vm8  ;;  %vm2236_vm10 = vcmp.ge.s32.totalorder %v2197_v33, 64  ;;  %vm2237_vm11 = vcmp.lt.s32.totalorder %v2197_v33, 96  ;;  %vm2244_vm13 = vcmp.ge.s32.totalorder %v2197_v33, 96 }
 0x634   : > { %v2167_v17 = vld [vmem:[#allocation3] sm:$0xff]  ;;  %vm2238_vm12 = vmand %vm2236_vm10, %vm2237_vm11  ;;  %vm2245_vm14 = vcmp.lt.s32.totalorder %v2197_v33, 128 }
 0x635   : > { %2172 = vperm.xlu0 %2823, %v2167_v17   ;;  %v2208_v10 = vsub.s32 %v2205_v29, %v2207_v43  ;;  %vm2246_vm15 = vmand %vm2244_vm13, %vm2245_vm14 }
 0x6b0   : > { %v2173_v28 = vpop.permute.xlu0 %2172 }
 0x6b1   : > { %v2175_v52 = vmul.f32 %v2173_v28, %v2169_v25 }
 0x6b3   : > { %v2176_v8 = vsub.f32 %v2168_v5, %v2175_v52 }
 0x6b5   : > { %v2177_v32 = vmul.f32 %v2176_v8, %v2176_v8 }
 0x6b7   : > { %v2178_v24 = vsel %vm1627_vm3, %v2177_v32, 0.0 }
 0x6b8   : > { %2179 = vadd.xlane.f32.xlu0 %v2178_v24 }
 0x741   : > { %v2180_v1 = vpop.xlane.xlu0 %2179 }
 0x742   : > { %v2181_v39 = vmax.f32 %v2180_v1, 1e-24 }
 0x744   : > { %2824 = vrsqrt.f32 %v2181_v39 }
 0x751   : > { %v2825_v44 = vpop.eup %2824 }
 0x752   : > { %v2183_v6 = vmul.f32 %v2825_v44, %v2176_v8 }
 0x754   : > { %v2184_v57 = vmul.f32 %v2183_v6, %v2183_v6 }
 0x756   : > { %v2185_v60 = vsel %vm1627_vm3, %v2184_v57, 0.0 }
 0x757   : > { %2186 = vadd.xlane.f32.xlu1 %v2185_v60 }
 0x7e0   : > { %v2187_v0 = vpop.xlane.xlu1 %2186 }
 0x7e1   : > { %v2188_v41 = vrot.slane %v2187_v0, 4 }
 0x7e3   : > { %v2189_v62 = vadd.f32 %v2188_v41, %v2187_v0 }
 0x7e5   : > { %v2190_v37 = vrot.slane %v2189_v62, 2 }
 0x7e7   : > { %v2191_v27 = vadd.f32 %v2190_v37, %v2189_v62 }
 0x7e9   : > { %v2192_v2 = vrot.slane %v2191_v27, 1 }
 0x7eb   : > { %v2193_v59 = vadd.f32 %v2192_v2, %v2191_v27 }
 0x7ed   : > { %v2194_v47 = vmax.f32 %v2193_v59, 1e-24 }
 0x7ef   : > { %2826 = vrsqrt.f32 %v2194_v47 }
 0x7fc   : > { %v2827_v54 = vpop.eup %2826 }
 0x7fd   : > { %v2196_v45 = vmul.f32 %v2827_v54, %v2183_v6 }
 0x7ff   : > { %v2209_v46 = vrot.slane %v2196_v45, %v2208_v10  ;;  %v2248_v53 = vcombine.high %v2196_v45, %v2196_v45  ;;  %2201 = vst.msk [vmem:[%s3075_s10] sm:$0x1] %vm2199_vm6, %v2196_v45 }
 0x801   : > { %v2210_v15 = vcombine.high %v2209_v46, %v2209_v46  ;;  %v2255_v23 = vrot.slane %v2248_v53, %v2208_v10  ;;  %v2217_v4 = vrot.slane %v2209_v46, %v2208_v10 }
 0x803   : > { %v2224_v40 = vrot.slane %v2210_v15, %v2208_v10  ;;  %v2265_v35 = vcombine.high %v2255_v23, %v2255_v23  ;;  %v2262_v55 = vrot.slane %v2255_v23, %v2208_v10  ;;  %v2232_v20 = vcombine.high %v2217_v4, %v2217_v4 }
 0x805   : > { %2225 = vrot.lane.b32.xlu1 %v2224_v40, %s2936_s30  ;;  %v2272_v7 = vrot.slane %v2265_v35, %v2208_v10  ;;  %2264 = vst.msk [vmem:[%s3075_s10 + $0x1] sm:$0x1] %vm2199_vm6, %v2262_v55  ;;  %v2277_v30 = vcombine.high %v2262_v55, %v2262_v55  ;;  %v2240_v21 = vcombine.high %v2224_v40, %v2224_v40 }
 0x807   : > { %v2282_v18 = vcombine.high %v2272_v7, %v2272_v7 }
 0x809   : > { %2283 = vrot.lane.b32.xlu0 %v2282_v18, %s2937_s15  ;;  %2233 = vrot.lane.b32.xlu1 %v2232_v20, %s2938_s18 }
 0x80d   : > { %2273 = vrot.lane.b32.xlu1 %v2272_v7, %s2936_s30 }
 0x811   : > { %2278 = vrot.lane.b32.xlu1 %v2277_v30, %s2938_s18 }
 0x815   : > { %2241 = vrot.lane.b32.xlu1 %v2240_v21, %s2937_s15 }
 0x877   : > { %v2226_v50 = vpop.permute.xlu1 %2225 }
 0x878   : > { %2231 = vst.msk [vmem:[%s3075_s10] sm:$0x1] %vm2230_vm9, %v2226_v50 }
 0x87b   : > { %v2234_v61 = vpop.permute.xlu1 %2233  ;;  %v2284_v51 = vpop.permute.xlu0 %2283 }
 0x87c   : > { %2239 = vst.msk [vmem:[%s3075_s10] sm:$0x1] %vm2238_vm12, %v2234_v61 }
 0x87f   : > { %v2274_v48 = vpop.permute.xlu1 %2273 }
 0x880   : > { %2276 = vst.msk [vmem:[%s3075_s10 + $0x1] sm:$0x1] %vm2230_vm9, %v2274_v48 }
 0x883   : > { %v2279_v63 = vpop.permute.xlu1 %2278 }
 0x884   : > { %2281 = vst.msk [vmem:[%s3075_s10 + $0x1] sm:$0x1] %vm2238_vm12, %v2279_v63 }
 0x885   : > { %2286 = vst.msk [vmem:[%s3075_s10 + $0x1] sm:$0x1] %vm2246_vm15, %v2284_v51 }
 0x887   : > { %v2242_v58 = vpop.permute.xlu1 %2241 }
 0x888   : > { %2247 = vst.msk [vmem:[%s3075_s10] sm:$0x1] %vm2246_vm15, %v2242_v58 }
 0x889 PF: > { %s2499_s24 = sshll.u32 %s2908_s9, 5  ;;  %s4227_s19 = sld [smem:[#allocation18_spill]] }
 0x88a   : > { %s2302_s23 = sshll.u32 %s3075_s10, 4  ;;  %s4228_s17 = sand.u32 1, %s2896_s28   ;;  %s2303_s23 = int_to_ptr.vmem [resolvable:$true] %s2302_s23 }
 0x88b   : > { %s2288_s21 = scalar_lea.sflag [#allocation6], %s4228_s17  ;;  %s2828_s26 = scalar_lea.vmem %s2303_s23, 32 }
 0x88c   : > { %p2829_p5 = scmp.ne.s32.totalorder %s2303_s23, %s2828_s26  ;;  %s2939_s16 = smov [#allocation5]  }
 0x88d   : > { %s2832_s20 = sshll.u32 %s2939_s16, 4  ;;  %s2833_s20 = int_to_ptr.vmem [resolvable:$false] %s2832_s20 }
 0x88e   : > { %p2830_p6 = pnand %p2829_p5, %p3034_p3  ;;  %s2834_s8 = scalar_lea.vmem %s2833_s20, 64 }
 0x88f   : > { %s2300_s25 = scalar_lea.hbm %s4227_s19, %s2499_s24  ;;  %p2835_p8 = scmp.lt.s32.totalorder %s2303_s23, %s2833_s20 }
 0x890   : > { %p2831_p7 = pneg %p2830_p6  ;;  %p2836_p10 = scmp.lt.s32.totalorder %s2834_s8, %s2828_s26 }
 0x892   : > { %p2837_p11 = por %p2836_p10, %p2835_p8 }
 0x894   : > { %p2838_p12 = pnand %p2837_p11, %p2831_p7 }
 0x896   : > { %2841 = shalt.err (!%p2838_p12)
}
 0x897   : > { %s2842_s9 = scalar_lea.hbm %s2300_s25, 32  ;;  %s2846_s29 = scalar_lea.hbm %s4227_s19, 64 }
 0x898   : > { %p2843_p13 = scmp.ne.s32.totalorder %s2300_s25, %s2842_s9  ;;  %p2847_p2 = scmp.lt.s32.totalorder %s2300_s25, %s4227_s19 }
 0x899   : > { %p2848_p4 = scmp.lt.s32.totalorder %s2846_s29, %s2842_s9 }
 0x89a   : > { %p2844_p0 = pnand %p2843_p13, %p3034_p3 }
 0x89b   : > { %p2849_p5 = por %p2848_p4, %p2847_p2 }
 0x89c   : > { %p2845_p1 = pneg %p2844_p0 }
 0x89e   : > { %p2850_p6 = pnand %p2849_p5, %p2845_p1 }
 0x8a0   : > { %2853 = shalt.err (!%p2850_p6)
}
 0x8a1   : > { %2626 = dma.vmem_to_hbm [thread:$0]  (%p3034_p3), %s2303_s23, 32, %s2300_s25, %s2288_s21  }
 0x8a2 PF: > { %s4229_s30 = sld [smem:[#allocation12_spill]] }
 0x8a3   : > { %s4230_s15 = sld [smem:[#allocation8_spill]] }
 0x8a8   : > { %p2632_p7 = scmp.ge.s32.totalorder %s4229_s30, 2 }
 0x8a9   : > { %s2314_s24 = sand.u32 1, %s4230_s15  }
 0x8aa   : > { %p2629_p8 = pnand %p2632_p7, %p3044_p9  ;;  %s2315_s13 = scalar_lea.sflag [#allocation6], %s2314_s24 }
 0x8ac   : > { %p2630_p10 = pneg %p2629_p8 }
 0x8ae   : > { %2887 = dma.done.wait (%p2630_p10), %s2315_s13, 32  }
 0x8af   : > { %2889 = vsyncadd (%p2630_p10), %s2315_s13, 4294967264  ;;  %s21_s12 = sadd.s32 1, %s4229_s30   ;;  %s4232_s14 = sld [smem:[#allocation9_spill]] }
 0x8b0   : > { %p18_p11 = scmp.ge.s32.totalorder %s21_s12, 6   ;;  %s4233_s29 = sld [smem:[#allocation17_spill]] }
 0x8b1   : > { %s4234_s30 = sld [smem:[#allocation10_spill]]  ;;  %s4238_s27 = smov %s2896_s28 }
 0x8b2   : > { %s4235_s9 = sld [smem:[#allocation11_spill]]  ;;  %20 = sbr.rel (!%p18_p11) target bundleno = 7 (0x7), region = 101 }
 0x8b3   : > { %s4236_s10 = sld [smem:[#allocation13_spill]] }
 0x8b4   : > { %s4237_s11 = sld [smem:[#allocation15_spill]] }
 0x8b5   : > { %s4239_s28 = smov %s4232_s14 }
 0x8b7   :  { %2320 = vsyncpa [#allocation6], 1 }
 0x8b8   :  { %2322 = vsyncpa [#allocation6 + $0x1], 1 }

</bundles_post_ra>
